<compile_context>
chip_gen: v7x
topology: tpu7x:2x2x1
jax: 0.10.0
libtpu: 0.0.40
codegen_flags: <defaults>
</compile_context>

<pallas_src>
import math

import jax
import jax.numpy as jnp
from jax.experimental import pallas as pl
from jax.experimental.pallas import tpu as pltpu

# ---------------- model hyper-parameters (small, consistent with module) ----
N_INPUT_TOKENS = 10
USE_SOS = True
VOCAB = N_INPUT_TOKENS + (1 if USE_SOS else 0)   # embedding rows
VOCAB_PAD = 16                                   # sublane-friendly padded rows
N_OUTPUTS = 5
N_OUT_PAD = 128                                  # lane-dense padded logits width
HID_PAD = 128                                    # lane-dense padded hidden width
D = 32            # state_size
NHEAD = 4
DH = D // NHEAD
NLAYERS = 2
FF = int(D * 2)   # ff_multiplier = 2
B = 2
T = 8
BT = B * T
LN_EPS = 1e-5
NEG_INF = -1e9
ATTN_SCALE = 1.0 / math.sqrt(DH)


# ---------------------------- Pallas kernel ---------------------------------
def _layernorm(x, g, b):
    mu = jnp.mean(x, axis=-1, keepdims=True)
    var = jnp.mean((x - mu) * (x - mu), axis=-1, keepdims=True)
    return (x - mu) * jax.lax.rsqrt(var + LN_EPS) * g + b


def fused_forward_kernel(src_ref, len_ref, idx_ref, emb_ref, pe_ref,
                         wqkv_ref, bqkv_ref, wo_ref, bo_ref, ln1_ref,
                         w1_ref, b1_ref, w2_ref, b2_ref, ln2_ref,
                         outw_ref, outb_ref,
                         hidden_ref, logits_ref):
    f32 = jnp.float32
    bf16 = jnp.bfloat16

    # ---- embedding lookup as one-hot matmul (exact, f32) + PE --------------
    tok = src_ref[...]                                              # (BT, 1) i32
    vocab_iota = jax.lax.broadcasted_iota(jnp.int32, (BT, VOCAB_PAD), 1)
    onehot = (vocab_iota == tok).astype(f32)                        # (BT, VOCAB_PAD)
    x = jnp.dot(onehot, emb_ref[...], preferred_element_type=f32) + pe_ref[...]

    # ---- additive bias over flattened (BT x BT) scores: batch block-diagonal
    # ---- + key-padding, built from SMEM scalar lengths (no int division) ---
    row_ids = jax.lax.broadcasted_iota(jnp.int32, (BT, BT), 0)
    col_ids = jax.lax.broadcasted_iota(jnp.int32, (BT, BT), 1)

    def _block_valid(b):
        row_in_b = (row_ids >= b * T) & (row_ids < (b + 1) * T)
        col_ok = (col_ids >= b * T) & (col_ids < b * T + len_ref[b])
        return row_in_b & col_ok

    valid = _block_valid(0)
    for b in range(1, B):
        valid = valid | _block_valid(b)
    mask_bias = jnp.where(valid, 0.0, NEG_INF).astype(f32)          # (BT, BT)
    mask_b = jnp.broadcast_to(mask_bias, (NHEAD, BT, BT))           # hoisted
    # TODO(synk): causal_encoder=True would AND a lower-triangular condition
    # into `valid` the same way; the module default (False) is implemented.

    # ---- NLAYERS post-norm encoder layers (all weights VMEM-resident) ------
    for l in range(NLAYERS):
        xb = x.astype(bf16)
        q = jnp.dot(xb, wqkv_ref[l, 0], preferred_element_type=f32) + bqkv_ref[l, 0]
        k = jnp.dot(xb, wqkv_ref[l, 1], preferred_element_type=f32) + bqkv_ref[l, 1]
        v = jnp.dot(xb, wqkv_ref[l, 2], preferred_element_type=f32) + bqkv_ref[l, 2]

        # heads -> leading batch axis; attention runs over the full flattened
        # BT sequence per head, cross-batch / padded keys killed by mask_b.
        qh = jnp.concatenate([q[None, :, h * DH:(h + 1) * DH]
                              for h in range(NHEAD)], 0).astype(bf16)
        kh = jnp.concatenate([k[None, :, h * DH:(h + 1) * DH]
                              for h in range(NHEAD)], 0).astype(bf16)
        vh = jnp.concatenate([v[None, :, h * DH:(h + 1) * DH]
                              for h in range(NHEAD)], 0).astype(bf16)

        s = jnp.einsum('hqd,hkd->hqk', qh, kh,
                       preferred_element_type=f32) * ATTN_SCALE
        s = s + mask_b
        s = s - jnp.max(s, axis=-1, keepdims=True)
        p = jnp.exp(s)
        p = p * pl.reciprocal(jnp.sum(p, axis=-1, keepdims=True), approx=True)
        ctx_h = jnp.einsum('hqk,hkd->hqd', p.astype(bf16), vh,
                           preferred_element_type=f32)              # (H, BT, DH)
        ctx = jnp.concatenate([ctx_h[h] for h in range(NHEAD)], axis=-1)

        attn = jnp.dot(ctx.astype(bf16), wo_ref[l],
                       preferred_element_type=f32) + bo_ref[l]
        x = _layernorm(x + attn, ln1_ref[l, 0:1, :], ln1_ref[l, 1:2, :])

        xb2 = x.astype(bf16)
        h1 = jnp.maximum(
            jnp.dot(xb2, w1_ref[l], preferred_element_type=f32) + b1_ref[l], 0.0)
        ffo = jnp.dot(h1.astype(bf16), w2_ref[l],
                      preferred_element_type=f32) + b2_ref[l]
        x = _layernorm(x + ffo, ln2_ref[l, 0:1, :], ln2_ref[l, 1:2, :])

    # ---- lane-dense hidden store (pad D -> 128 so the vst is unmasked) -----
    hidden_ref[...] = jnp.concatenate(
        [x, jnp.zeros((BT, HID_PAD - D), f32)], axis=-1).astype(hidden_ref.dtype)

    # ---- CLS gather as one-hot row-select matmul + padded output linear ----
    pos1 = jax.lax.broadcasted_iota(jnp.int32, (1, BT), 1)
    sel = jnp.concatenate([(pos1 == (idx_ref[b] + b * T)).astype(f32)
                           for b in range(B)], axis=0)              # (B, BT)
    h_cls = jnp.dot(sel, x, preferred_element_type=f32)             # (B, D)
    logits_ref[...] = (jnp.dot(h_cls, outw_ref[...], preferred_element_type=f32)
                       + outb_ref[...]).astype(logits_ref.dtype)


# ----------------------------- plain-JAX glue --------------------------------
def sinusoidal_pe(max_len, d):
    pos = jnp.arange(max_len, dtype=jnp.float32)[:, None]
    div = jnp.exp(jnp.arange(0, d, 2, dtype=jnp.float32) * (-math.log(10000.0) / d))
    pe = jnp.zeros((max_len, d), jnp.float32)
    pe = pe.at[:, 0::2].set(jnp.sin(pos * div))
    pe = pe.at[:, 1::2].set(jnp.cos(pos * div))
    return pe


def init_params(key):
    ks = jax.random.split(key, 4 + NLAYERS)
    params = {}
    # Embedding: PyTorch nn.Embedding default N(0,1); pre-padded to 16 rows.
    emb = jax.random.normal(ks[0], (VOCAB, D), jnp.float32)
    params["emb_pad"] = jnp.zeros((VOCAB_PAD, D), jnp.float32).at[:VOCAB].set(emb)
    # Sinusoidal PE pre-tiled over the batch (hoisted out of the forward).
    params["pe_flat"] = jnp.tile(sinusoidal_pe(T, D), (B, 1))       # (BT, D)

    # Output layer: xavier_uniform weight, PyTorch-Linear-default uniform bias,
    # padded to a lane-dense 128-wide slab.
    lim = math.sqrt(6.0 / (D + N_OUTPUTS))
    out_w = jax.random.uniform(ks[1], (D, N_OUTPUTS), jnp.float32, -lim, lim)
    bb = 1.0 / math.sqrt(D)
    out_b = jax.random.uniform(ks[2], (N_OUTPUTS,), jnp.float32, -bb, bb)
    params["outw_pad"] = jnp.zeros((D, N_OUT_PAD), jnp.float32).at[:, :N_OUTPUTS].set(out_w)
    params["outb_pad"] = jnp.zeros((1, N_OUT_PAD), jnp.float32).at[0, :N_OUTPUTS].set(out_b)

    wqkv, bqkv, wo, bo, ln1, w1, b1, w2, b2, ln2 = ([] for _ in range(10))
    for l in range(NLAYERS):
        lk = jax.random.split(ks[4 + l], 8)
        lim_d = math.sqrt(6.0 / (D + D))
        lim_1 = math.sqrt(6.0 / (D + FF))
        wq = jax.random.uniform(lk[0], (D, D), jnp.float32, -lim_d, lim_d)
        wk = jax.random.uniform(lk[1], (D, D), jnp.float32, -lim_d, lim_d)
        wv = jax.random.uniform(lk[2], (D, D), jnp.float32, -lim_d, lim_d)
        wo_l = jax.random.uniform(lk[3], (D, D), jnp.float32, -lim_d, lim_d)
        w1_l = jax.random.uniform(lk[4], (D, FF), jnp.float32, -lim_1, lim_1)
        w2_l = jax.random.uniform(lk[5], (FF, D), jnp.float32, -lim_1, lim_1)
        wqkv.append(jnp.stack([wq, wk, wv]))                        # (3, D, D)
        bqkv.append(jnp.zeros((3, 1, D), jnp.float32))
        wo.append(wo_l)
        bo.append(jnp.zeros((1, D), jnp.float32))
        w1.append(w1_l)
        b1.append(jnp.zeros((1, FF), jnp.float32))
        w2.append(w2_l)
        b2.append(jnp.zeros((1, D), jnp.float32))
        ln1.append(jnp.stack([jnp.ones((D,), jnp.float32), jnp.zeros((D,), jnp.float32)]))
        ln2.append(jnp.stack([jnp.ones((D,), jnp.float32), jnp.zeros((D,), jnp.float32)]))

    # NOTE (parity): matmuls compute x @ W, i.e. W is the transpose of the
    # PyTorch (out, in) layout; loading real checkpoints requires a transpose
    # and preserving the Q,K,V in_proj split order.
    params["wqkv"] = jnp.stack(wqkv).astype(jnp.bfloat16)  # (NLAYERS, 3, D, D)
    params["bqkv"] = jnp.stack(bqkv)                       # (NLAYERS, 3, 1, D)
    params["wo"] = jnp.stack(wo).astype(jnp.bfloat16)      # (NLAYERS, D, D)
    params["bo"] = jnp.stack(bo)                           # (NLAYERS, 1, D)
    params["ln1"] = jnp.stack(ln1)                         # (NLAYERS, 2, D)
    params["w1"] = jnp.stack(w1).astype(jnp.bfloat16)      # (NLAYERS, D, FF)
    params["b1"] = jnp.stack(b1)                           # (NLAYERS, 1, FF)
    params["w2"] = jnp.stack(w2).astype(jnp.bfloat16)      # (NLAYERS, FF, D)
    params["b2"] = jnp.stack(b2)                           # (NLAYERS, 1, D)
    params["ln2"] = jnp.stack(ln2)                         # (NLAYERS, 2, D)
    return params


# -------- advisory cost estimate + memory-space specs (module-level) --------
_FLOPS = (2 * BT * VOCAB_PAD * D
          + NLAYERS * (3 * 2 * BT * D * D                 # q/k/v projections
                       + 2 * 2 * NHEAD * BT * BT * DH     # scores + context
                       + 2 * BT * D * D                   # out projection
                       + 2 * 2 * BT * D * FF)             # FFN
          + 2 * B * BT * D + 2 * B * D * N_OUT_PAD)
_TRANS = NLAYERS * NHEAD * BT * (BT + 1)                  # exp + approx recip
_BYTES = (BT * 4 + 2 * B * 4
          + VOCAB_PAD * D * 4 + BT * D * 4
          + NLAYERS * (3 * D * D * 2 + 3 * D * 4 + D * D * 2 + D * 4
                       + 4 * D * 4 + D * FF * 2 + FF * 4 + FF * D * 2 + D * 4)
          + D * N_OUT_PAD * 4 + N_OUT_PAD * 4
          + BT * HID_PAD * 4 + B * N_OUT_PAD * 4)

_VMEM_SPEC = pl.BlockSpec(memory_space=pltpu.MemorySpace.VMEM)
_SMEM_SPEC = pl.BlockSpec(memory_space=pltpu.MemorySpace.SMEM)


@jax.jit
def transformer_encoder_cls_forward(params, src, src_len, cls_head_idx):
    """Mirrors TransformerEncoderCLS.forward (scale_mode='none',
    use_pos_embedding=True, causal_encoder=False, dropout=0) in ONE kernel."""
    src_flat = src.astype(jnp.int32).reshape(BT, 1)
    len_in = src_len.astype(jnp.int32).reshape(B)          # SMEM scalars
    idx_in = cls_head_idx.astype(jnp.int32).reshape(B)     # SMEM scalars

    hidden_pad, logits_pad = pl.pallas_call(
        fused_forward_kernel,
        out_shape=(jax.ShapeDtypeStruct((BT, HID_PAD), jnp.float32),
                   jax.ShapeDtypeStruct((B, N_OUT_PAD), jnp.float32)),
        in_specs=[_VMEM_SPEC, _SMEM_SPEC, _SMEM_SPEC] + [_VMEM_SPEC] * 14,
        cost_estimate=pl.CostEstimate(flops=_FLOPS, transcendentals=_TRANS,
                                      bytes_accessed=_BYTES),
    )(src_flat, len_in, idx_in, params["emb_pad"], params["pe_flat"],
      params["wqkv"], params["bqkv"], params["wo"], params["bo"], params["ln1"],
      params["w1"], params["b1"], params["w2"], params["b2"], params["ln2"],
      params["outw_pad"], params["outb_pad"])

    hidden_states = hidden_pad[:, :D].reshape(B, T, D)
    logits = logits_pad[:, :N_OUTPUTS]
    return {"logits": logits, "hidden_states": hidden_states, "length": src_len}


# ----------------------------------- main ------------------------------------
if __name__ == "__main__":
    key = jax.random.PRNGKey(0)
    pkey, dkey = jax.random.split(key)
    params = init_params(pkey)

    src = jax.random.randint(dkey, (B, T), 0, N_INPUT_TOKENS, dtype=jnp.int32)
    src_len = jnp.array([T, 5], dtype=jnp.int32)      # must be >= 1 per element
    cls_head_idx = jnp.array([0, 1], dtype=jnp.int32)

    out = transformer_encoder_cls_forward(params, src, src_len, cls_head_idx)
    jax.block_until_ready(out["logits"])
    jax.block_until_ready(out["hidden_states"])

    assert out["logits"].shape == (B, N_OUTPUTS)
    assert out["hidden_states"].shape == (B, T, D)
    assert out["length"].shape == (B,)
    assert bool(jnp.all(jnp.isfinite(out["logits"])))
    assert bool(jnp.all(jnp.isfinite(out["hidden_states"])))
    print("KERNEL_OK")
</pallas_src>

<mosaic_0001>
module attributes {stable_mosaic.version = 11 : i64} {
  func.func @fused_forward_kernel(%arg0: memref<16x1xi32, #tpu.memory_space<vmem>>, %arg1: memref<2xi32, #tpu.memory_space<smem>>, %arg2: memref<2xi32, #tpu.memory_space<smem>>, %arg3: memref<16x32xf32, #tpu.memory_space<vmem>>, %arg4: memref<16x32xf32, #tpu.memory_space<vmem>>, %arg5: memref<2x3x32x32xbf16, #tpu.memory_space<vmem>>, %arg6: memref<2x3x1x32xf32, #tpu.memory_space<vmem>>, %arg7: memref<2x32x32xbf16, #tpu.memory_space<vmem>>, %arg8: memref<2x1x32xf32, #tpu.memory_space<vmem>>, %arg9: memref<2x2x32xf32, #tpu.memory_space<vmem>>, %arg10: memref<2x32x64xbf16, #tpu.memory_space<vmem>>, %arg11: memref<2x1x64xf32, #tpu.memory_space<vmem>>, %arg12: memref<2x64x32xbf16, #tpu.memory_space<vmem>>, %arg13: memref<2x1x32xf32, #tpu.memory_space<vmem>>, %arg14: memref<2x2x32xf32, #tpu.memory_space<vmem>>, %arg15: memref<32x128xf32, #tpu.memory_space<vmem>>, %arg16: memref<1x128xf32, #tpu.memory_space<vmem>>, %arg17: memref<16x128xf32, #tpu.memory_space<vmem>>, %arg18: memref<2x128xf32, #tpu.memory_space<vmem>>) attributes {dimension_semantics = [], scalar_prefetch = 0 : i64, scratch_operands = 0 : i64, tpu.core_type = #tpu.core_type<tc>} {
    %c0 = arith.constant 0 : index
    %c0_0 = arith.constant 0 : index
    %0 = vector.load %arg0[%c0, %c0_0] : memref<16x1xi32, #tpu.memory_space<vmem>>, vector<16x1xi32>
    %1 = tpu.iota {dimensions = array<i32: 1>} : vector<16x16xi32>
    %2 = vector.broadcast %0 : vector<16x1xi32> to vector<16x16xi32>
    %3 = arith.cmpi eq, %1, %2 : vector<16x16xi32>
    %4 = arith.extui %3 : vector<16x16xi1> to vector<16x16xi32>
    %5 = arith.sitofp %4 : vector<16x16xi32> to vector<16x16xf32>
    %c0_1 = arith.constant 0 : index
    %c0_2 = arith.constant 0 : index
    %6 = vector.load %arg3[%c0_1, %c0_2] : memref<16x32xf32, #tpu.memory_space<vmem>>, vector<16x32xf32>
    %cst = arith.constant dense<0.000000e+00> : vector<16x32xf32>
    %7 = tpu.matmul %5, %6, %cst {dimension_numbers = #tpu.dot_dimension_numbers<[1], [0], [0], [1], [0, 0, 1, 1], [], []>} : vector<16x16xf32>, vector<16x32xf32>, vector<16x32xf32> -> vector<16x32xf32>
    %c0_3 = arith.constant 0 : index
    %c0_4 = arith.constant 0 : index
    %8 = vector.load %arg4[%c0_3, %c0_4] : memref<16x32xf32, #tpu.memory_space<vmem>>, vector<16x32xf32>
    %9 = arith.addf %7, %8 : vector<16x32xf32>
    %10 = tpu.iota {dimensions = array<i32: 0>} : vector<16x16xi32>
    %11 = tpu.iota {dimensions = array<i32: 1>} : vector<16x16xi32>
    %c0_i32 = arith.constant 0 : i32
    %12 = vector.broadcast %c0_i32 : i32 to vector<16x16xi32>
    %13 = arith.cmpi sge, %10, %12 : vector<16x16xi32>
    %c8_i32 = arith.constant 8 : i32
    %14 = vector.broadcast %c8_i32 : i32 to vector<16x16xi32>
    %15 = arith.cmpi slt, %10, %14 : vector<16x16xi32>
    %16 = arith.andi %13, %15 : vector<16x16xi1>
    %c0_i32_5 = arith.constant 0 : i32
    %17 = vector.broadcast %c0_i32_5 : i32 to vector<16x16xi32>
    %18 = arith.cmpi sge, %11, %17 : vector<16x16xi32>
    %c0_6 = arith.constant 0 : index
    %19 = memref.load %arg1[%c0_6] : memref<2xi32, #tpu.memory_space<smem>>
    %c0_i32_7 = arith.constant 0 : i32
    %20 = arith.addi %c0_i32_7, %19 : i32
    %21 = vector.broadcast %20 : i32 to vector<16x16xi32>
    %22 = arith.cmpi slt, %11, %21 : vector<16x16xi32>
    %23 = arith.andi %18, %22 : vector<16x16xi1>
    %24 = arith.andi %16, %23 : vector<16x16xi1>
    %c8_i32_8 = arith.constant 8 : i32
    %25 = vector.broadcast %c8_i32_8 : i32 to vector<16x16xi32>
    %26 = arith.cmpi sge, %10, %25 : vector<16x16xi32>
    %c16_i32 = arith.constant 16 : i32
    %27 = vector.broadcast %c16_i32 : i32 to vector<16x16xi32>
    %28 = arith.cmpi slt, %10, %27 : vector<16x16xi32>
    %29 = arith.andi %26, %28 : vector<16x16xi1>
    %c8_i32_9 = arith.constant 8 : i32
    %30 = vector.broadcast %c8_i32_9 : i32 to vector<16x16xi32>
    %31 = arith.cmpi sge, %11, %30 : vector<16x16xi32>
    %c1 = arith.constant 1 : index
    %32 = memref.load %arg1[%c1] : memref<2xi32, #tpu.memory_space<smem>>
    %c8_i32_10 = arith.constant 8 : i32
    %33 = arith.addi %c8_i32_10, %32 : i32
    %34 = vector.broadcast %33 : i32 to vector<16x16xi32>
    %35 = arith.cmpi slt, %11, %34 : vector<16x16xi32>
    %36 = arith.andi %31, %35 : vector<16x16xi1>
    %37 = arith.andi %29, %36 : vector<16x16xi1>
    %38 = arith.ori %24, %37 : vector<16x16xi1>
    %cst_11 = arith.constant 0.000000e+00 : f32
    %cst_12 = arith.constant -1.000000e+09 : f32
    %39 = vector.broadcast %cst_11 : f32 to vector<16x16xf32>
    %40 = vector.broadcast %cst_12 : f32 to vector<16x16xf32>
    %41 = arith.select %38, %39, %40 : vector<16x16xi1>, vector<16x16xf32>
    %42 = vector.shape_cast %41 : vector<16x16xf32> to vector<1x16x16xf32>
    %43 = vector.broadcast %42 : vector<1x16x16xf32> to vector<4x16x16xf32>
    %44 = arith.truncf %9 : vector<16x32xf32> to vector<16x32xbf16>
    %c0_13 = arith.constant 0 : index
    %c0_14 = arith.constant 0 : index
    %c0_15 = arith.constant 0 : index
    %c0_16 = arith.constant 0 : index
    %45 = vector.load %arg5[%c0_13, %c0_14, %c0_15, %c0_16] : memref<2x3x32x32xbf16, #tpu.memory_space<vmem>>, vector<1x1x32x32xbf16>
    %46 = vector.shape_cast %45 : vector<1x1x32x32xbf16> to vector<32x32xbf16>
    %cst_17 = arith.constant dense<0.000000e+00> : vector<16x32xf32>
    %47 = tpu.matmul %44, %46, %cst_17 {dimension_numbers = #tpu.dot_dimension_numbers<[1], [0], [0], [1], [0, 0, 1, 1], [], []>} : vector<16x32xbf16>, vector<32x32xbf16>, vector<16x32xf32> -> vector<16x32xf32>
    %c0_18 = arith.constant 0 : index
    %c0_19 = arith.constant 0 : index
    %c0_20 = arith.constant 0 : index
    %c0_21 = arith.constant 0 : index
    %48 = vector.load %arg6[%c0_18, %c0_19, %c0_20, %c0_21] : memref<2x3x1x32xf32, #tpu.memory_space<vmem>>, vector<1x1x1x32xf32>
    %49 = vector.shape_cast %48 : vector<1x1x1x32xf32> to vector<1x32xf32>
    %50 = vector.broadcast %49 : vector<1x32xf32> to vector<16x32xf32>
    %51 = arith.addf %47, %50 : vector<16x32xf32>
    %c0_22 = arith.constant 0 : index
    %c1_23 = arith.constant 1 : index
    %c0_24 = arith.constant 0 : index
    %c0_25 = arith.constant 0 : index
    %52 = vector.load %arg5[%c0_22, %c1_23, %c0_24, %c0_25] : memref<2x3x32x32xbf16, #tpu.memory_space<vmem>>, vector<1x1x32x32xbf16>
    %53 = vector.shape_cast %52 : vector<1x1x32x32xbf16> to vector<32x32xbf16>
    %cst_26 = arith.constant dense<0.000000e+00> : vector<16x32xf32>
    %54 = tpu.matmul %44, %53, %cst_26 {dimension_numbers = #tpu.dot_dimension_numbers<[1], [0], [0], [1], [0, 0, 1, 1], [], []>} : vector<16x32xbf16>, vector<32x32xbf16>, vector<16x32xf32> -> vector<16x32xf32>
    %c0_27 = arith.constant 0 : index
    %c1_28 = arith.constant 1 : index
    %c0_29 = arith.constant 0 : index
    %c0_30 = arith.constant 0 : index
    %55 = vector.load %arg6[%c0_27, %c1_28, %c0_29, %c0_30] : memref<2x3x1x32xf32, #tpu.memory_space<vmem>>, vector<1x1x1x32xf32>
    %56 = vector.shape_cast %55 : vector<1x1x1x32xf32> to vector<1x32xf32>
    %57 = vector.broadcast %56 : vector<1x32xf32> to vector<16x32xf32>
    %58 = arith.addf %54, %57 : vector<16x32xf32>
    %c0_31 = arith.constant 0 : index
    %c2 = arith.constant 2 : index
    %c0_32 = arith.constant 0 : index
    %c0_33 = arith.constant 0 : index
    %59 = vector.load %arg5[%c0_31, %c2, %c0_32, %c0_33] : memref<2x3x32x32xbf16, #tpu.memory_space<vmem>>, vector<1x1x32x32xbf16>
    %60 = vector.shape_cast %59 : vector<1x1x32x32xbf16> to vector<32x32xbf16>
    %cst_34 = arith.constant dense<0.000000e+00> : vector<16x32xf32>
    %61 = tpu.matmul %44, %60, %cst_34 {dimension_numbers = #tpu.dot_dimension_numbers<[1], [0], [0], [1], [0, 0, 1, 1], [], []>} : vector<16x32xbf16>, vector<32x32xbf16>, vector<16x32xf32> -> vector<16x32xf32>
    %c0_35 = arith.constant 0 : index
    %c2_36 = arith.constant 2 : index
    %c0_37 = arith.constant 0 : index
    %c0_38 = arith.constant 0 : index
    %62 = vector.load %arg6[%c0_35, %c2_36, %c0_37, %c0_38] : memref<2x3x1x32xf32, #tpu.memory_space<vmem>>, vector<1x1x1x32xf32>
    %63 = vector.shape_cast %62 : vector<1x1x1x32xf32> to vector<1x32xf32>
    %64 = vector.broadcast %63 : vector<1x32xf32> to vector<16x32xf32>
    %65 = arith.addf %61, %64 : vector<16x32xf32>
    %66 = vector.extract_strided_slice %51 {offsets = [0, 0], sizes = [16, 8], strides = [1, 1]} : vector<16x32xf32> to vector<16x8xf32>
    %67 = vector.shape_cast %66 : vector<16x8xf32> to vector<1x16x8xf32>
    %68 = vector.extract_strided_slice %51 {offsets = [0, 8], sizes = [16, 8], strides = [1, 1]} : vector<16x32xf32> to vector<16x8xf32>
    %69 = vector.shape_cast %68 : vector<16x8xf32> to vector<1x16x8xf32>
    %70 = vector.extract_strided_slice %51 {offsets = [0, 16], sizes = [16, 8], strides = [1, 1]} : vector<16x32xf32> to vector<16x8xf32>
    %71 = vector.shape_cast %70 : vector<16x8xf32> to vector<1x16x8xf32>
    %72 = vector.extract_strided_slice %51 {offsets = [0, 24], sizes = [16, 8], strides = [1, 1]} : vector<16x32xf32> to vector<16x8xf32>
    %73 = vector.shape_cast %72 : vector<16x8xf32> to vector<1x16x8xf32>
    %74 = tpu.concatenate %67, %69, %71, %73 in 0 : vector<1x16x8xf32>, vector<1x16x8xf32>, vector<1x16x8xf32>, vector<1x16x8xf32> -> vector<4x16x8xf32>
    %75 = arith.truncf %74 : vector<4x16x8xf32> to vector<4x16x8xbf16>
    %76 = vector.extract_strided_slice %58 {offsets = [0, 0], sizes = [16, 8], strides = [1, 1]} : vector<16x32xf32> to vector<16x8xf32>
    %77 = vector.shape_cast %76 : vector<16x8xf32> to vector<1x16x8xf32>
    %78 = vector.extract_strided_slice %58 {offsets = [0, 8], sizes = [16, 8], strides = [1, 1]} : vector<16x32xf32> to vector<16x8xf32>
    %79 = vector.shape_cast %78 : vector<16x8xf32> to vector<1x16x8xf32>
    %80 = vector.extract_strided_slice %58 {offsets = [0, 16], sizes = [16, 8], strides = [1, 1]} : vector<16x32xf32> to vector<16x8xf32>
    %81 = vector.shape_cast %80 : vector<16x8xf32> to vector<1x16x8xf32>
    %82 = vector.extract_strided_slice %58 {offsets = [0, 24], sizes = [16, 8], strides = [1, 1]} : vector<16x32xf32> to vector<16x8xf32>
    %83 = vector.shape_cast %82 : vector<16x8xf32> to vector<1x16x8xf32>
    %84 = tpu.concatenate %77, %79, %81, %83 in 0 : vector<1x16x8xf32>, vector<1x16x8xf32>, vector<1x16x8xf32>, vector<1x16x8xf32> -> vector<4x16x8xf32>
    %85 = arith.truncf %84 : vector<4x16x8xf32> to vector<4x16x8xbf16>
    %86 = vector.extract_strided_slice %65 {offsets = [0, 0], sizes = [16, 8], strides = [1, 1]} : vector<16x32xf32> to vector<16x8xf32>
    %87 = vector.shape_cast %86 : vector<16x8xf32> to vector<1x16x8xf32>
    %88 = vector.extract_strided_slice %65 {offsets = [0, 8], sizes = [16, 8], strides = [1, 1]} : vector<16x32xf32> to vector<16x8xf32>
    %89 = vector.shape_cast %88 : vector<16x8xf32> to vector<1x16x8xf32>
    %90 = vector.extract_strided_slice %65 {offsets = [0, 16], sizes = [16, 8], strides = [1, 1]} : vector<16x32xf32> to vector<16x8xf32>
    %91 = vector.shape_cast %90 : vector<16x8xf32> to vector<1x16x8xf32>
    %92 = vector.extract_strided_slice %65 {offsets = [0, 24], sizes = [16, 8], strides = [1, 1]} : vector<16x32xf32> to vector<16x8xf32>
    %93 = vector.shape_cast %92 : vector<16x8xf32> to vector<1x16x8xf32>
    %94 = tpu.concatenate %87, %89, %91, %93 in 0 : vector<1x16x8xf32>, vector<1x16x8xf32>, vector<1x16x8xf32>, vector<1x16x8xf32> -> vector<4x16x8xf32>
    %95 = arith.truncf %94 : vector<4x16x8xf32> to vector<4x16x8xbf16>
    "tpu.trace_start"() <{level = 10 : i32, message = "hqd,hkd->hqk"}> : () -> ()
    %cst_39 = arith.constant dense<0.000000e+00> : vector<4x16x16xf32>
    %96 = tpu.matmul %75, %85, %cst_39 {dimension_numbers = #tpu.dot_dimension_numbers<[2], [2], [1], [1], [0, 0, 0, 1, 1, 1], [0], [0]>} : vector<4x16x8xbf16>, vector<4x16x8xbf16>, vector<4x16x16xf32> -> vector<4x16x16xf32>
    "tpu.trace_stop"() : () -> ()
    %cst_40 = arith.constant 0.353553385 : f32
    %97 = vector.broadcast %cst_40 : f32 to vector<4x16x16xf32>
    %98 = arith.mulf %96, %97 : vector<4x16x16xf32>
    %99 = arith.addf %98, %43 : vector<4x16x16xf32>
    %cst_41 = arith.constant dense<0xFF800000> : vector<4x16xf32>
    %100 = vector.multi_reduction <maximumf>, %99, %cst_41 [2] : vector<4x16x16xf32> to vector<4x16xf32>
    %101 = vector.shape_cast %100 : vector<4x16xf32> to vector<4x16x1xf32>
    %102 = vector.broadcast %101 : vector<4x16x1xf32> to vector<4x16x16xf32>
    %103 = arith.subf %99, %102 : vector<4x16x16xf32>
    %104 = math.exp %103 : vector<4x16x16xf32>
    %cst_42 = arith.constant dense<0.000000e+00> : vector<4x16xf32>
    %105 = vector.multi_reduction <add>, %104, %cst_42 [2] : vector<4x16x16xf32> to vector<4x16xf32>
    %106 = vector.shape_cast %105 : vector<4x16xf32> to vector<4x16x1xf32>
    %107 = tpu.reciprocal %106 {approx = true} : vector<4x16x1xf32> -> vector<4x16x1xf32>
    %108 = vector.broadcast %107 : vector<4x16x1xf32> to vector<4x16x16xf32>
    %109 = arith.mulf %104, %108 : vector<4x16x16xf32>
    %110 = arith.truncf %109 : vector<4x16x16xf32> to vector<4x16x16xbf16>
    "tpu.trace_start"() <{level = 10 : i32, message = "hqk,hkd->hqd"}> : () -> ()
    %cst_43 = arith.constant dense<0.000000e+00> : vector<4x16x8xf32>
    %111 = tpu.matmul %110, %95, %cst_43 {dimension_numbers = #tpu.dot_dimension_numbers<[2], [1], [1], [2], [0, 0, 0, 1, 1, 2], [0], [0]>} : vector<4x16x16xbf16>, vector<4x16x8xbf16>, vector<4x16x8xf32> -> vector<4x16x8xf32>
    "tpu.trace_stop"() : () -> ()
    %112 = vector.extract_strided_slice %111 {offsets = [0, 0, 0], sizes = [1, 16, 8], strides = [1, 1, 1]} : vector<4x16x8xf32> to vector<1x16x8xf32>
    %113 = vector.shape_cast %112 : vector<1x16x8xf32> to vector<16x8xf32>
    %114 = vector.extract_strided_slice %111 {offsets = [1, 0, 0], sizes = [1, 16, 8], strides = [1, 1, 1]} : vector<4x16x8xf32> to vector<1x16x8xf32>
    %115 = vector.shape_cast %114 : vector<1x16x8xf32> to vector<16x8xf32>
    %116 = vector.extract_strided_slice %111 {offsets = [2, 0, 0], sizes = [1, 16, 8], strides = [1, 1, 1]} : vector<4x16x8xf32> to vector<1x16x8xf32>
    %117 = vector.shape_cast %116 : vector<1x16x8xf32> to vector<16x8xf32>
    %118 = vector.extract_strided_slice %111 {offsets = [3, 0, 0], sizes = [1, 16, 8], strides = [1, 1, 1]} : vector<4x16x8xf32> to vector<1x16x8xf32>
    %119 = vector.shape_cast %118 : vector<1x16x8xf32> to vector<16x8xf32>
    %120 = tpu.concatenate %113, %115, %117, %119 in 1 : vector<16x8xf32>, vector<16x8xf32>, vector<16x8xf32>, vector<16x8xf32> -> vector<16x32xf32>
    %121 = arith.truncf %120 : vector<16x32xf32> to vector<16x32xbf16>
    %c0_44 = arith.constant 0 : index
    %c0_45 = arith.constant 0 : index
    %c0_46 = arith.constant 0 : index
    %122 = vector.load %arg7[%c0_44, %c0_45, %c0_46] : memref<2x32x32xbf16, #tpu.memory_space<vmem>>, vector<1x32x32xbf16>
    %123 = vector.shape_cast %122 : vector<1x32x32xbf16> to vector<32x32xbf16>
    %cst_47 = arith.constant dense<0.000000e+00> : vector<16x32xf32>
    %124 = tpu.matmul %121, %123, %cst_47 {dimension_numbers = #tpu.dot_dimension_numbers<[1], [0], [0], [1], [0, 0, 1, 1], [], []>} : vector<16x32xbf16>, vector<32x32xbf16>, vector<16x32xf32> -> vector<16x32xf32>
    %c0_48 = arith.constant 0 : index
    %c0_49 = arith.constant 0 : index
    %c0_50 = arith.constant 0 : index
    %125 = vector.load %arg8[%c0_48, %c0_49, %c0_50] : memref<2x1x32xf32, #tpu.memory_space<vmem>>, vector<1x1x32xf32>
    %126 = vector.shape_cast %125 : vector<1x1x32xf32> to vector<1x32xf32>
    %127 = vector.broadcast %126 : vector<1x32xf32> to vector<16x32xf32>
    %128 = arith.addf %124, %127 : vector<16x32xf32>
    %129 = arith.addf %9, %128 : vector<16x32xf32>
    %c0_51 = arith.constant 0 : index
    %c0_52 = arith.constant 0 : index
    %c0_53 = arith.constant 0 : index
    %130 = vector.load %arg9[%c0_51, %c0_52, %c0_53] : memref<2x2x32xf32, #tpu.memory_space<vmem>>, vector<1x1x32xf32>
    %131 = vector.shape_cast %130 : vector<1x1x32xf32> to vector<1x32xf32>
    %c0_54 = arith.constant 0 : index
    %c1_55 = arith.constant 1 : index
    %c0_56 = arith.constant 0 : index
    %132 = vector.load %arg9[%c0_54, %c1_55, %c0_56] : memref<2x2x32xf32, #tpu.memory_space<vmem>>, vector<1x1x32xf32>
    %133 = vector.shape_cast %132 : vector<1x1x32xf32> to vector<1x32xf32>
    %cst_57 = arith.constant dense<0.000000e+00> : vector<16xf32>
    %134 = vector.multi_reduction <add>, %129, %cst_57 [1] : vector<16x32xf32> to vector<16xf32>
    %135 = vector.shape_cast %134 : vector<16xf32> to vector<16x1xf32>
    %cst_58 = arith.constant 3.200000e+01 : f32
    %136 = vector.broadcast %cst_58 : f32 to vector<16x1xf32>
    %137 = arith.divf %135, %136 : vector<16x1xf32>
    %138 = vector.broadcast %137 : vector<16x1xf32> to vector<16x32xf32>
    %139 = arith.subf %129, %138 : vector<16x32xf32>
    %140 = vector.broadcast %137 : vector<16x1xf32> to vector<16x32xf32>
    %141 = arith.subf %129, %140 : vector<16x32xf32>
    %142 = arith.mulf %139, %141 : vector<16x32xf32>
    %cst_59 = arith.constant dense<0.000000e+00> : vector<16xf32>
    %143 = vector.multi_reduction <add>, %142, %cst_59 [1] : vector<16x32xf32> to vector<16xf32>
    %144 = vector.shape_cast %143 : vector<16xf32> to vector<16x1xf32>
    %cst_60 = arith.constant 3.200000e+01 : f32
    %145 = vector.broadcast %cst_60 : f32 to vector<16x1xf32>
    %146 = arith.divf %144, %145 : vector<16x1xf32>
    %147 = vector.broadcast %137 : vector<16x1xf32> to vector<16x32xf32>
    %148 = arith.subf %129, %147 : vector<16x32xf32>
    %cst_61 = arith.constant 9.99999974E-6 : f32
    %149 = vector.broadcast %cst_61 : f32 to vector<16x1xf32>
    %150 = arith.addf %146, %149 : vector<16x1xf32>
    %151 = math.rsqrt %150 : vector<16x1xf32>
    %152 = vector.broadcast %151 : vector<16x1xf32> to vector<16x32xf32>
    %153 = arith.mulf %148, %152 : vector<16x32xf32>
    %154 = vector.broadcast %131 : vector<1x32xf32> to vector<16x32xf32>
    %155 = arith.mulf %153, %154 : vector<16x32xf32>
    %156 = vector.broadcast %133 : vector<1x32xf32> to vector<16x32xf32>
    %157 = arith.addf %155, %156 : vector<16x32xf32>
    %158 = arith.truncf %157 : vector<16x32xf32> to vector<16x32xbf16>
    %c0_62 = arith.constant 0 : index
    %c0_63 = arith.constant 0 : index
    %c0_64 = arith.constant 0 : index
    %159 = vector.load %arg10[%c0_62, %c0_63, %c0_64] : memref<2x32x64xbf16, #tpu.memory_space<vmem>>, vector<1x32x64xbf16>
    %160 = vector.shape_cast %159 : vector<1x32x64xbf16> to vector<32x64xbf16>
    %cst_65 = arith.constant dense<0.000000e+00> : vector<16x64xf32>
    %161 = tpu.matmul %158, %160, %cst_65 {dimension_numbers = #tpu.dot_dimension_numbers<[1], [0], [0], [1], [0, 0, 1, 1], [], []>} : vector<16x32xbf16>, vector<32x64xbf16>, vector<16x64xf32> -> vector<16x64xf32>
    %c0_66 = arith.constant 0 : index
    %c0_67 = arith.constant 0 : index
    %c0_68 = arith.constant 0 : index
    %162 = vector.load %arg11[%c0_66, %c0_67, %c0_68] : memref<2x1x64xf32, #tpu.memory_space<vmem>>, vector<1x1x64xf32>
    %163 = vector.shape_cast %162 : vector<1x1x64xf32> to vector<1x64xf32>
    %164 = vector.broadcast %163 : vector<1x64xf32> to vector<16x64xf32>
    %165 = arith.addf %161, %164 : vector<16x64xf32>
    %cst_69 = arith.constant 0.000000e+00 : f32
    %166 = vector.broadcast %cst_69 : f32 to vector<16x64xf32>
    %167 = arith.maximumf %165, %166 : vector<16x64xf32>
    %168 = arith.truncf %167 : vector<16x64xf32> to vector<16x64xbf16>
    %c0_70 = arith.constant 0 : index
    %c0_71 = arith.constant 0 : index
    %c0_72 = arith.constant 0 : index
    %169 = vector.load %arg12[%c0_70, %c0_71, %c0_72] : memref<2x64x32xbf16, #tpu.memory_space<vmem>>, vector<1x64x32xbf16>
    %170 = vector.shape_cast %169 : vector<1x64x32xbf16> to vector<64x32xbf16>
    %cst_73 = arith.constant dense<0.000000e+00> : vector<16x32xf32>
    %171 = tpu.matmul %168, %170, %cst_73 {dimension_numbers = #tpu.dot_dimension_numbers<[1], [0], [0], [1], [0, 0, 1, 1], [], []>} : vector<16x64xbf16>, vector<64x32xbf16>, vector<16x32xf32> -> vector<16x32xf32>
    %c0_74 = arith.constant 0 : index
    %c0_75 = arith.constant 0 : index
    %c0_76 = arith.constant 0 : index
    %172 = vector.load %arg13[%c0_74, %c0_75, %c0_76] : memref<2x1x32xf32, #tpu.memory_space<vmem>>, vector<1x1x32xf32>
    %173 = vector.shape_cast %172 : vector<1x1x32xf32> to vector<1x32xf32>
    %174 = vector.broadcast %173 : vector<1x32xf32> to vector<16x32xf32>
    %175 = arith.addf %171, %174 : vector<16x32xf32>
    %176 = arith.addf %157, %175 : vector<16x32xf32>
    %c0_77 = arith.constant 0 : index
    %c0_78 = arith.constant 0 : index
    %c0_79 = arith.constant 0 : index
    %177 = vector.load %arg14[%c0_77, %c0_78, %c0_79] : memref<2x2x32xf32, #tpu.memory_space<vmem>>, vector<1x1x32xf32>
    %178 = vector.shape_cast %177 : vector<1x1x32xf32> to vector<1x32xf32>
    %c0_80 = arith.constant 0 : index
    %c1_81 = arith.constant 1 : index
    %c0_82 = arith.constant 0 : index
    %179 = vector.load %arg14[%c0_80, %c1_81, %c0_82] : memref<2x2x32xf32, #tpu.memory_space<vmem>>, vector<1x1x32xf32>
    %180 = vector.shape_cast %179 : vector<1x1x32xf32> to vector<1x32xf32>
    %cst_83 = arith.constant dense<0.000000e+00> : vector<16xf32>
    %181 = vector.multi_reduction <add>, %176, %cst_83 [1] : vector<16x32xf32> to vector<16xf32>
    %182 = vector.shape_cast %181 : vector<16xf32> to vector<16x1xf32>
    %cst_84 = arith.constant 3.200000e+01 : f32
    %183 = vector.broadcast %cst_84 : f32 to vector<16x1xf32>
    %184 = arith.divf %182, %183 : vector<16x1xf32>
    %185 = vector.broadcast %184 : vector<16x1xf32> to vector<16x32xf32>
    %186 = arith.subf %176, %185 : vector<16x32xf32>
    %187 = vector.broadcast %184 : vector<16x1xf32> to vector<16x32xf32>
    %188 = arith.subf %176, %187 : vector<16x32xf32>
    %189 = arith.mulf %186, %188 : vector<16x32xf32>
    %cst_85 = arith.constant dense<0.000000e+00> : vector<16xf32>
    %190 = vector.multi_reduction <add>, %189, %cst_85 [1] : vector<16x32xf32> to vector<16xf32>
    %191 = vector.shape_cast %190 : vector<16xf32> to vector<16x1xf32>
    %cst_86 = arith.constant 3.200000e+01 : f32
    %192 = vector.broadcast %cst_86 : f32 to vector<16x1xf32>
    %193 = arith.divf %191, %192 : vector<16x1xf32>
    %194 = vector.broadcast %184 : vector<16x1xf32> to vector<16x32xf32>
    %195 = arith.subf %176, %194 : vector<16x32xf32>
    %cst_87 = arith.constant 9.99999974E-6 : f32
    %196 = vector.broadcast %cst_87 : f32 to vector<16x1xf32>
    %197 = arith.addf %193, %196 : vector<16x1xf32>
    %198 = math.rsqrt %197 : vector<16x1xf32>
    %199 = vector.broadcast %198 : vector<16x1xf32> to vector<16x32xf32>
    %200 = arith.mulf %195, %199 : vector<16x32xf32>
    %201 = vector.broadcast %178 : vector<1x32xf32> to vector<16x32xf32>
    %202 = arith.mulf %200, %201 : vector<16x32xf32>
    %203 = vector.broadcast %180 : vector<1x32xf32> to vector<16x32xf32>
    %204 = arith.addf %202, %203 : vector<16x32xf32>
    %205 = arith.truncf %204 : vector<16x32xf32> to vector<16x32xbf16>
    %c1_88 = arith.constant 1 : index
    %c0_89 = arith.constant 0 : index
    %c0_90 = arith.constant 0 : index
    %c0_91 = arith.constant 0 : index
    %206 = vector.load %arg5[%c1_88, %c0_89, %c0_90, %c0_91] : memref<2x3x32x32xbf16, #tpu.memory_space<vmem>>, vector<1x1x32x32xbf16>
    %207 = vector.shape_cast %206 : vector<1x1x32x32xbf16> to vector<32x32xbf16>
    %cst_92 = arith.constant dense<0.000000e+00> : vector<16x32xf32>
    %208 = tpu.matmul %205, %207, %cst_92 {dimension_numbers = #tpu.dot_dimension_numbers<[1], [0], [0], [1], [0, 0, 1, 1], [], []>} : vector<16x32xbf16>, vector<32x32xbf16>, vector<16x32xf32> -> vector<16x32xf32>
    %c1_93 = arith.constant 1 : index
    %c0_94 = arith.constant 0 : index
    %c0_95 = arith.constant 0 : index
    %c0_96 = arith.constant 0 : index
    %209 = vector.load %arg6[%c1_93, %c0_94, %c0_95, %c0_96] : memref<2x3x1x32xf32, #tpu.memory_space<vmem>>, vector<1x1x1x32xf32>
    %210 = vector.shape_cast %209 : vector<1x1x1x32xf32> to vector<1x32xf32>
    %211 = vector.broadcast %210 : vector<1x32xf32> to vector<16x32xf32>
    %212 = arith.addf %208, %211 : vector<16x32xf32>
    %c1_97 = arith.constant 1 : index
    %c1_98 = arith.constant 1 : index
    %c0_99 = arith.constant 0 : index
    %c0_100 = arith.constant 0 : index
    %213 = vector.load %arg5[%c1_97, %c1_98, %c0_99, %c0_100] : memref<2x3x32x32xbf16, #tpu.memory_space<vmem>>, vector<1x1x32x32xbf16>
    %214 = vector.shape_cast %213 : vector<1x1x32x32xbf16> to vector<32x32xbf16>
    %cst_101 = arith.constant dense<0.000000e+00> : vector<16x32xf32>
    %215 = tpu.matmul %205, %214, %cst_101 {dimension_numbers = #tpu.dot_dimension_numbers<[1], [0], [0], [1], [0, 0, 1, 1], [], []>} : vector<16x32xbf16>, vector<32x32xbf16>, vector<16x32xf32> -> vector<16x32xf32>
    %c1_102 = arith.constant 1 : index
    %c1_103 = arith.constant 1 : index
    %c0_104 = arith.constant 0 : index
    %c0_105 = arith.constant 0 : index
    %216 = vector.load %arg6[%c1_102, %c1_103, %c0_104, %c0_105] : memref<2x3x1x32xf32, #tpu.memory_space<vmem>>, vector<1x1x1x32xf32>
    %217 = vector.shape_cast %216 : vector<1x1x1x32xf32> to vector<1x32xf32>
    %218 = vector.broadcast %217 : vector<1x32xf32> to vector<16x32xf32>
    %219 = arith.addf %215, %218 : vector<16x32xf32>
    %c1_106 = arith.constant 1 : index
    %c2_107 = arith.constant 2 : index
    %c0_108 = arith.constant 0 : index
    %c0_109 = arith.constant 0 : index
    %220 = vector.load %arg5[%c1_106, %c2_107, %c0_108, %c0_109] : memref<2x3x32x32xbf16, #tpu.memory_space<vmem>>, vector<1x1x32x32xbf16>
    %221 = vector.shape_cast %220 : vector<1x1x32x32xbf16> to vector<32x32xbf16>
    %cst_110 = arith.constant dense<0.000000e+00> : vector<16x32xf32>
    %222 = tpu.matmul %205, %221, %cst_110 {dimension_numbers = #tpu.dot_dimension_numbers<[1], [0], [0], [1], [0, 0, 1, 1], [], []>} : vector<16x32xbf16>, vector<32x32xbf16>, vector<16x32xf32> -> vector<16x32xf32>
    %c1_111 = arith.constant 1 : index
    %c2_112 = arith.constant 2 : index
    %c0_113 = arith.constant 0 : index
    %c0_114 = arith.constant 0 : index
    %223 = vector.load %arg6[%c1_111, %c2_112, %c0_113, %c0_114] : memref<2x3x1x32xf32, #tpu.memory_space<vmem>>, vector<1x1x1x32xf32>
    %224 = vector.shape_cast %223 : vector<1x1x1x32xf32> to vector<1x32xf32>
    %225 = vector.broadcast %224 : vector<1x32xf32> to vector<16x32xf32>
    %226 = arith.addf %222, %225 : vector<16x32xf32>
    %227 = vector.extract_strided_slice %212 {offsets = [0, 0], sizes = [16, 8], strides = [1, 1]} : vector<16x32xf32> to vector<16x8xf32>
    %228 = vector.shape_cast %227 : vector<16x8xf32> to vector<1x16x8xf32>
    %229 = vector.extract_strided_slice %212 {offsets = [0, 8], sizes = [16, 8], strides = [1, 1]} : vector<16x32xf32> to vector<16x8xf32>
    %230 = vector.shape_cast %229 : vector<16x8xf32> to vector<1x16x8xf32>
    %231 = vector.extract_strided_slice %212 {offsets = [0, 16], sizes = [16, 8], strides = [1, 1]} : vector<16x32xf32> to vector<16x8xf32>
    %232 = vector.shape_cast %231 : vector<16x8xf32> to vector<1x16x8xf32>
    %233 = vector.extract_strided_slice %212 {offsets = [0, 24], sizes = [16, 8], strides = [1, 1]} : vector<16x32xf32> to vector<16x8xf32>
    %234 = vector.shape_cast %233 : vector<16x8xf32> to vector<1x16x8xf32>
    %235 = tpu.concatenate %228, %230, %232, %234 in 0 : vector<1x16x8xf32>, vector<1x16x8xf32>, vector<1x16x8xf32>, vector<1x16x8xf32> -> vector<4x16x8xf32>
    %236 = arith.truncf %235 : vector<4x16x8xf32> to vector<4x16x8xbf16>
    %237 = vector.extract_strided_slice %219 {offsets = [0, 0], sizes = [16, 8], strides = [1, 1]} : vector<16x32xf32> to vector<16x8xf32>
    %238 = vector.shape_cast %237 : vector<16x8xf32> to vector<1x16x8xf32>
    %239 = vector.extract_strided_slice %219 {offsets = [0, 8], sizes = [16, 8], strides = [1, 1]} : vector<16x32xf32> to vector<16x8xf32>
    %240 = vector.shape_cast %239 : vector<16x8xf32> to vector<1x16x8xf32>
    %241 = vector.extract_strided_slice %219 {offsets = [0, 16], sizes = [16, 8], strides = [1, 1]} : vector<16x32xf32> to vector<16x8xf32>
    %242 = vector.shape_cast %241 : vector<16x8xf32> to vector<1x16x8xf32>
    %243 = vector.extract_strided_slice %219 {offsets = [0, 24], sizes = [16, 8], strides = [1, 1]} : vector<16x32xf32> to vector<16x8xf32>
    %244 = vector.shape_cast %243 : vector<16x8xf32> to vector<1x16x8xf32>
    %245 = tpu.concatenate %238, %240, %242, %244 in 0 : vector<1x16x8xf32>, vector<1x16x8xf32>, vector<1x16x8xf32>, vector<1x16x8xf32> -> vector<4x16x8xf32>
    %246 = arith.truncf %245 : vector<4x16x8xf32> to vector<4x16x8xbf16>
    %247 = vector.extract_strided_slice %226 {offsets = [0, 0], sizes = [16, 8], strides = [1, 1]} : vector<16x32xf32> to vector<16x8xf32>
    %248 = vector.shape_cast %247 : vector<16x8xf32> to vector<1x16x8xf32>
    %249 = vector.extract_strided_slice %226 {offsets = [0, 8], sizes = [16, 8], strides = [1, 1]} : vector<16x32xf32> to vector<16x8xf32>
    %250 = vector.shape_cast %249 : vector<16x8xf32> to vector<1x16x8xf32>
    %251 = vector.extract_strided_slice %226 {offsets = [0, 16], sizes = [16, 8], strides = [1, 1]} : vector<16x32xf32> to vector<16x8xf32>
    %252 = vector.shape_cast %251 : vector<16x8xf32> to vector<1x16x8xf32>
    %253 = vector.extract_strided_slice %226 {offsets = [0, 24], sizes = [16, 8], strides = [1, 1]} : vector<16x32xf32> to vector<16x8xf32>
    %254 = vector.shape_cast %253 : vector<16x8xf32> to vector<1x16x8xf32>
    %255 = tpu.concatenate %248, %250, %252, %254 in 0 : vector<1x16x8xf32>, vector<1x16x8xf32>, vector<1x16x8xf32>, vector<1x16x8xf32> -> vector<4x16x8xf32>
    %256 = arith.truncf %255 : vector<4x16x8xf32> to vector<4x16x8xbf16>
    "tpu.trace_start"() <{level = 10 : i32, message = "hqd,hkd->hqk"}> : () -> ()
    %cst_115 = arith.constant dense<0.000000e+00> : vector<4x16x16xf32>
    %257 = tpu.matmul %236, %246, %cst_115 {dimension_numbers = #tpu.dot_dimension_numbers<[2], [2], [1], [1], [0, 0, 0, 1, 1, 1], [0], [0]>} : vector<4x16x8xbf16>, vector<4x16x8xbf16>, vector<4x16x16xf32> -> vector<4x16x16xf32>
    "tpu.trace_stop"() : () -> ()
    %cst_116 = arith.constant 0.353553385 : f32
    %258 = vector.broadcast %cst_116 : f32 to vector<4x16x16xf32>
    %259 = arith.mulf %257, %258 : vector<4x16x16xf32>
    %260 = arith.addf %259, %43 : vector<4x16x16xf32>
    %cst_117 = arith.constant dense<0xFF800000> : vector<4x16xf32>
    %261 = vector.multi_reduction <maximumf>, %260, %cst_117 [2] : vector<4x16x16xf32> to vector<4x16xf32>
    %262 = vector.shape_cast %261 : vector<4x16xf32> to vector<4x16x1xf32>
    %263 = vector.broadcast %262 : vector<4x16x1xf32> to vector<4x16x16xf32>
    %264 = arith.subf %260, %263 : vector<4x16x16xf32>
    %265 = math.exp %264 : vector<4x16x16xf32>
    %cst_118 = arith.constant dense<0.000000e+00> : vector<4x16xf32>
    %266 = vector.multi_reduction <add>, %265, %cst_118 [2] : vector<4x16x16xf32> to vector<4x16xf32>
    %267 = vector.shape_cast %266 : vector<4x16xf32> to vector<4x16x1xf32>
    %268 = tpu.reciprocal %267 {approx = true} : vector<4x16x1xf32> -> vector<4x16x1xf32>
    %269 = vector.broadcast %268 : vector<4x16x1xf32> to vector<4x16x16xf32>
    %270 = arith.mulf %265, %269 : vector<4x16x16xf32>
    %271 = arith.truncf %270 : vector<4x16x16xf32> to vector<4x16x16xbf16>
    "tpu.trace_start"() <{level = 10 : i32, message = "hqk,hkd->hqd"}> : () -> ()
    %cst_119 = arith.constant dense<0.000000e+00> : vector<4x16x8xf32>
    %272 = tpu.matmul %271, %256, %cst_119 {dimension_numbers = #tpu.dot_dimension_numbers<[2], [1], [1], [2], [0, 0, 0, 1, 1, 2], [0], [0]>} : vector<4x16x16xbf16>, vector<4x16x8xbf16>, vector<4x16x8xf32> -> vector<4x16x8xf32>
    "tpu.trace_stop"() : () -> ()
    %273 = vector.extract_strided_slice %272 {offsets = [0, 0, 0], sizes = [1, 16, 8], strides = [1, 1, 1]} : vector<4x16x8xf32> to vector<1x16x8xf32>
    %274 = vector.shape_cast %273 : vector<1x16x8xf32> to vector<16x8xf32>
    %275 = vector.extract_strided_slice %272 {offsets = [1, 0, 0], sizes = [1, 16, 8], strides = [1, 1, 1]} : vector<4x16x8xf32> to vector<1x16x8xf32>
    %276 = vector.shape_cast %275 : vector<1x16x8xf32> to vector<16x8xf32>
    %277 = vector.extract_strided_slice %272 {offsets = [2, 0, 0], sizes = [1, 16, 8], strides = [1, 1, 1]} : vector<4x16x8xf32> to vector<1x16x8xf32>
    %278 = vector.shape_cast %277 : vector<1x16x8xf32> to vector<16x8xf32>
    %279 = vector.extract_strided_slice %272 {offsets = [3, 0, 0], sizes = [1, 16, 8], strides = [1, 1, 1]} : vector<4x16x8xf32> to vector<1x16x8xf32>
    %280 = vector.shape_cast %279 : vector<1x16x8xf32> to vector<16x8xf32>
    %281 = tpu.concatenate %274, %276, %278, %280 in 1 : vector<16x8xf32>, vector<16x8xf32>, vector<16x8xf32>, vector<16x8xf32> -> vector<16x32xf32>
    %282 = arith.truncf %281 : vector<16x32xf32> to vector<16x32xbf16>
    %c1_120 = arith.constant 1 : index
    %c0_121 = arith.constant 0 : index
    %c0_122 = arith.constant 0 : index
    %283 = vector.load %arg7[%c1_120, %c0_121, %c0_122] : memref<2x32x32xbf16, #tpu.memory_space<vmem>>, vector<1x32x32xbf16>
    %284 = vector.shape_cast %283 : vector<1x32x32xbf16> to vector<32x32xbf16>
    %cst_123 = arith.constant dense<0.000000e+00> : vector<16x32xf32>
    %285 = tpu.matmul %282, %284, %cst_123 {dimension_numbers = #tpu.dot_dimension_numbers<[1], [0], [0], [1], [0, 0, 1, 1], [], []>} : vector<16x32xbf16>, vector<32x32xbf16>, vector<16x32xf32> -> vector<16x32xf32>
    %c1_124 = arith.constant 1 : index
    %c0_125 = arith.constant 0 : index
    %c0_126 = arith.constant 0 : index
    %286 = vector.load %arg8[%c1_124, %c0_125, %c0_126] : memref<2x1x32xf32, #tpu.memory_space<vmem>>, vector<1x1x32xf32>
    %287 = vector.shape_cast %286 : vector<1x1x32xf32> to vector<1x32xf32>
    %288 = vector.broadcast %287 : vector<1x32xf32> to vector<16x32xf32>
    %289 = arith.addf %285, %288 : vector<16x32xf32>
    %290 = arith.addf %204, %289 : vector<16x32xf32>
    %c1_127 = arith.constant 1 : index
    %c0_128 = arith.constant 0 : index
    %c0_129 = arith.constant 0 : index
    %291 = vector.load %arg9[%c1_127, %c0_128, %c0_129] : memref<2x2x32xf32, #tpu.memory_space<vmem>>, vector<1x1x32xf32>
    %292 = vector.shape_cast %291 : vector<1x1x32xf32> to vector<1x32xf32>
    %c1_130 = arith.constant 1 : index
    %c1_131 = arith.constant 1 : index
    %c0_132 = arith.constant 0 : index
    %293 = vector.load %arg9[%c1_130, %c1_131, %c0_132] : memref<2x2x32xf32, #tpu.memory_space<vmem>>, vector<1x1x32xf32>
    %294 = vector.shape_cast %293 : vector<1x1x32xf32> to vector<1x32xf32>
    %cst_133 = arith.constant dense<0.000000e+00> : vector<16xf32>
    %295 = vector.multi_reduction <add>, %290, %cst_133 [1] : vector<16x32xf32> to vector<16xf32>
    %296 = vector.shape_cast %295 : vector<16xf32> to vector<16x1xf32>
    %cst_134 = arith.constant 3.200000e+01 : f32
    %297 = vector.broadcast %cst_134 : f32 to vector<16x1xf32>
    %298 = arith.divf %296, %297 : vector<16x1xf32>
    %299 = vector.broadcast %298 : vector<16x1xf32> to vector<16x32xf32>
    %300 = arith.subf %290, %299 : vector<16x32xf32>
    %301 = vector.broadcast %298 : vector<16x1xf32> to vector<16x32xf32>
    %302 = arith.subf %290, %301 : vector<16x32xf32>
    %303 = arith.mulf %300, %302 : vector<16x32xf32>
    %cst_135 = arith.constant dense<0.000000e+00> : vector<16xf32>
    %304 = vector.multi_reduction <add>, %303, %cst_135 [1] : vector<16x32xf32> to vector<16xf32>
    %305 = vector.shape_cast %304 : vector<16xf32> to vector<16x1xf32>
    %cst_136 = arith.constant 3.200000e+01 : f32
    %306 = vector.broadcast %cst_136 : f32 to vector<16x1xf32>
    %307 = arith.divf %305, %306 : vector<16x1xf32>
    %308 = vector.broadcast %298 : vector<16x1xf32> to vector<16x32xf32>
    %309 = arith.subf %290, %308 : vector<16x32xf32>
    %cst_137 = arith.constant 9.99999974E-6 : f32
    %310 = vector.broadcast %cst_137 : f32 to vector<16x1xf32>
    %311 = arith.addf %307, %310 : vector<16x1xf32>
    %312 = math.rsqrt %311 : vector<16x1xf32>
    %313 = vector.broadcast %312 : vector<16x1xf32> to vector<16x32xf32>
    %314 = arith.mulf %309, %313 : vector<16x32xf32>
    %315 = vector.broadcast %292 : vector<1x32xf32> to vector<16x32xf32>
    %316 = arith.mulf %314, %315 : vector<16x32xf32>
    %317 = vector.broadcast %294 : vector<1x32xf32> to vector<16x32xf32>
    %318 = arith.addf %316, %317 : vector<16x32xf32>
    %319 = arith.truncf %318 : vector<16x32xf32> to vector<16x32xbf16>
    %c1_138 = arith.constant 1 : index
    %c0_139 = arith.constant 0 : index
    %c0_140 = arith.constant 0 : index
    %320 = vector.load %arg10[%c1_138, %c0_139, %c0_140] : memref<2x32x64xbf16, #tpu.memory_space<vmem>>, vector<1x32x64xbf16>
    %321 = vector.shape_cast %320 : vector<1x32x64xbf16> to vector<32x64xbf16>
    %cst_141 = arith.constant dense<0.000000e+00> : vector<16x64xf32>
    %322 = tpu.matmul %319, %321, %cst_141 {dimension_numbers = #tpu.dot_dimension_numbers<[1], [0], [0], [1], [0, 0, 1, 1], [], []>} : vector<16x32xbf16>, vector<32x64xbf16>, vector<16x64xf32> -> vector<16x64xf32>
    %c1_142 = arith.constant 1 : index
    %c0_143 = arith.constant 0 : index
    %c0_144 = arith.constant 0 : index
    %323 = vector.load %arg11[%c1_142, %c0_143, %c0_144] : memref<2x1x64xf32, #tpu.memory_space<vmem>>, vector<1x1x64xf32>
    %324 = vector.shape_cast %323 : vector<1x1x64xf32> to vector<1x64xf32>
    %325 = vector.broadcast %324 : vector<1x64xf32> to vector<16x64xf32>
    %326 = arith.addf %322, %325 : vector<16x64xf32>
    %cst_145 = arith.constant 0.000000e+00 : f32
    %327 = vector.broadcast %cst_145 : f32 to vector<16x64xf32>
    %328 = arith.maximumf %326, %327 : vector<16x64xf32>
    %329 = arith.truncf %328 : vector<16x64xf32> to vector<16x64xbf16>
    %c1_146 = arith.constant 1 : index
    %c0_147 = arith.constant 0 : index
    %c0_148 = arith.constant 0 : index
    %330 = vector.load %arg12[%c1_146, %c0_147, %c0_148] : memref<2x64x32xbf16, #tpu.memory_space<vmem>>, vector<1x64x32xbf16>
    %331 = vector.shape_cast %330 : vector<1x64x32xbf16> to vector<64x32xbf16>
    %cst_149 = arith.constant dense<0.000000e+00> : vector<16x32xf32>
    %332 = tpu.matmul %329, %331, %cst_149 {dimension_numbers = #tpu.dot_dimension_numbers<[1], [0], [0], [1], [0, 0, 1, 1], [], []>} : vector<16x64xbf16>, vector<64x32xbf16>, vector<16x32xf32> -> vector<16x32xf32>
    %c1_150 = arith.constant 1 : index
    %c0_151 = arith.constant 0 : index
    %c0_152 = arith.constant 0 : index
    %333 = vector.load %arg13[%c1_150, %c0_151, %c0_152] : memref<2x1x32xf32, #tpu.memory_space<vmem>>, vector<1x1x32xf32>
    %334 = vector.shape_cast %333 : vector<1x1x32xf32> to vector<1x32xf32>
    %335 = vector.broadcast %334 : vector<1x32xf32> to vector<16x32xf32>
    %336 = arith.addf %332, %335 : vector<16x32xf32>
    %337 = arith.addf %318, %336 : vector<16x32xf32>
    %c1_153 = arith.constant 1 : index
    %c0_154 = arith.constant 0 : index
    %c0_155 = arith.constant 0 : index
    %338 = vector.load %arg14[%c1_153, %c0_154, %c0_155] : memref<2x2x32xf32, #tpu.memory_space<vmem>>, vector<1x1x32xf32>
    %339 = vector.shape_cast %338 : vector<1x1x32xf32> to vector<1x32xf32>
    %c1_156 = arith.constant 1 : index
    %c1_157 = arith.constant 1 : index
    %c0_158 = arith.constant 0 : index
    %340 = vector.load %arg14[%c1_156, %c1_157, %c0_158] : memref<2x2x32xf32, #tpu.memory_space<vmem>>, vector<1x1x32xf32>
    %341 = vector.shape_cast %340 : vector<1x1x32xf32> to vector<1x32xf32>
    %cst_159 = arith.constant dense<0.000000e+00> : vector<16xf32>
    %342 = vector.multi_reduction <add>, %337, %cst_159 [1] : vector<16x32xf32> to vector<16xf32>
    %343 = vector.shape_cast %342 : vector<16xf32> to vector<16x1xf32>
    %cst_160 = arith.constant 3.200000e+01 : f32
    %344 = vector.broadcast %cst_160 : f32 to vector<16x1xf32>
    %345 = arith.divf %343, %344 : vector<16x1xf32>
    %346 = vector.broadcast %345 : vector<16x1xf32> to vector<16x32xf32>
    %347 = arith.subf %337, %346 : vector<16x32xf32>
    %348 = vector.broadcast %345 : vector<16x1xf32> to vector<16x32xf32>
    %349 = arith.subf %337, %348 : vector<16x32xf32>
    %350 = arith.mulf %347, %349 : vector<16x32xf32>
    %cst_161 = arith.constant dense<0.000000e+00> : vector<16xf32>
    %351 = vector.multi_reduction <add>, %350, %cst_161 [1] : vector<16x32xf32> to vector<16xf32>
    %352 = vector.shape_cast %351 : vector<16xf32> to vector<16x1xf32>
    %cst_162 = arith.constant 3.200000e+01 : f32
    %353 = vector.broadcast %cst_162 : f32 to vector<16x1xf32>
    %354 = arith.divf %352, %353 : vector<16x1xf32>
    %355 = vector.broadcast %345 : vector<16x1xf32> to vector<16x32xf32>
    %356 = arith.subf %337, %355 : vector<16x32xf32>
    %cst_163 = arith.constant 9.99999974E-6 : f32
    %357 = vector.broadcast %cst_163 : f32 to vector<16x1xf32>
    %358 = arith.addf %354, %357 : vector<16x1xf32>
    %359 = math.rsqrt %358 : vector<16x1xf32>
    %360 = vector.broadcast %359 : vector<16x1xf32> to vector<16x32xf32>
    %361 = arith.mulf %356, %360 : vector<16x32xf32>
    %362 = vector.broadcast %339 : vector<1x32xf32> to vector<16x32xf32>
    %363 = arith.mulf %361, %362 : vector<16x32xf32>
    %364 = vector.broadcast %341 : vector<1x32xf32> to vector<16x32xf32>
    %365 = arith.addf %363, %364 : vector<16x32xf32>
    %cst_164 = arith.constant 0.000000e+00 : f32
    %366 = vector.broadcast %cst_164 : f32 to vector<16x96xf32>
    %367 = tpu.concatenate %365, %366 in 1 : vector<16x32xf32>, vector<16x96xf32> -> vector<16x128xf32>
    %c0_165 = arith.constant 0 : index
    %c0_166 = arith.constant 0 : index
    %368 = vector.load %arg17[%c0_165, %c0_166] : memref<16x128xf32, #tpu.memory_space<vmem>>, vector<16x128xf32>
    tpu.vector_store %arg17[%c0_165, %c0_166], %367 {strides = array<i32>} : memref<16x128xf32, #tpu.memory_space<vmem>>, vector<16x128xf32>,
    %369 = tpu.iota {dimensions = array<i32: 1>} : vector<1x16xi32>
    %c0_167 = arith.constant 0 : index
    %370 = memref.load %arg2[%c0_167] : memref<2xi32, #tpu.memory_space<smem>>
    %c0_i32_168 = arith.constant 0 : i32
    %371 = arith.addi %370, %c0_i32_168 : i32
    %372 = vector.broadcast %371 : i32 to vector<1x16xi32>
    %373 = arith.cmpi eq, %369, %372 : vector<1x16xi32>
    %374 = arith.extui %373 : vector<1x16xi1> to vector<1x16xi32>
    %375 = arith.sitofp %374 : vector<1x16xi32> to vector<1x16xf32>
    %c1_169 = arith.constant 1 : index
    %376 = memref.load %arg2[%c1_169] : memref<2xi32, #tpu.memory_space<smem>>
    %c8_i32_170 = arith.constant 8 : i32
    %377 = arith.addi %376, %c8_i32_170 : i32
    %378 = vector.broadcast %377 : i32 to vector<1x16xi32>
    %379 = arith.cmpi eq, %369, %378 : vector<1x16xi32>
    %380 = arith.extui %379 : vector<1x16xi1> to vector<1x16xi32>
    %381 = arith.sitofp %380 : vector<1x16xi32> to vector<1x16xf32>
    %382 = tpu.concatenate %375, %381 in 0 : vector<1x16xf32>, vector<1x16xf32> -> vector<2x16xf32>
    %cst_171 = arith.constant dense<0.000000e+00> : vector<2x32xf32>
    %383 = tpu.matmul %382, %365, %cst_171 {dimension_numbers = #tpu.dot_dimension_numbers<[1], [0], [0], [1], [0, 0, 1, 1], [], []>} : vector<2x16xf32>, vector<16x32xf32>, vector<2x32xf32> -> vector<2x32xf32>
    %c0_172 = arith.constant 0 : index
    %c0_173 = arith.constant 0 : index
    %384 = vector.load %arg15[%c0_172, %c0_173] : memref<32x128xf32, #tpu.memory_space<vmem>>, vector<32x128xf32>
    %cst_174 = arith.constant dense<0.000000e+00> : vector<2x128xf32>
    %385 = tpu.matmul %383, %384, %cst_174 {dimension_numbers = #tpu.dot_dimension_numbers<[1], [0], [0], [1], [0, 0, 1, 1], [], []>} : vector<2x32xf32>, vector<32x128xf32>, vector<2x128xf32> -> vector<2x128xf32>
    %c0_175 = arith.constant 0 : index
    %c0_176 = arith.constant 0 : index
    %386 = vector.load %arg16[%c0_175, %c0_176] : memref<1x128xf32, #tpu.memory_space<vmem>>, vector<1x128xf32>
    %387 = vector.broadcast %386 : vector<1x128xf32> to vector<2x128xf32>
    %388 = arith.addf %385, %387 : vector<2x128xf32>
    %c0_177 = arith.constant 0 : index
    %c0_178 = arith.constant 0 : index
    %389 = vector.load %arg18[%c0_177, %c0_178] : memref<2x128xf32, #tpu.memory_space<vmem>>, vector<2x128xf32>
    tpu.vector_store %arg18[%c0_177, %c0_178], %388 {strides = array<i32>} : memref<2x128xf32, #tpu.memory_space<vmem>>, vector<2x128xf32>,
    return
  }
}

</mosaic_0001>

<bundles_post_ra>
// kernel: transformer_encoder_cls_forward.1
= control target key start
LH: loop header
LB: loop body
LE: loop exit
PB: predicated region body
PF: predicated region fallthrough
CT: control target
= control target key end

     0   :  { %s4275_s0 = inlined_call_operand.vmem [shape: s32[16,1], index: 0, kind: input, shape index: {}]   ;;  %s4276_s1 = inlined_call_operand.hbm [shape: s32[2], index: 1, kind: input, shape index: {}]   ;;  %s4277_s2 = inlined_call_operand.hbm [shape: s32[2], index: 2, kind: input, shape index: {}]   ;;  %s4278_s3 = inlined_call_operand.hbm [shape: f32[16,32], index: 3, kind: input, shape index: {}]   ;;  %s4279_s4 = inlined_call_operand.hbm [shape: f32[16,32], index: 4, kind: input, shape index: {}]   ;;  %s4280_s5 = inlined_call_operand.vmem [shape: bf16[2,3,32,32], index: 5, kind: input, shape index: {}]   ;;  %s4281_s6 = inlined_call_operand.vmem [shape: f32[2,3,1,32], index: 6, kind: input, shape index: {}]   ;;  %s4282_s7 = inlined_call_operand.hbm [shape: bf16[2,32,32], index: 7, kind: input, shape index: {}]   ;;  %s4283_s8 = inlined_call_operand.vmem [shape: f32[2,1,32], index: 8, kind: input, shape index: {}]   ;;  %s4284_s9 = inlined_call_operand.vmem [shape: f32[2,2,32], index: 9, kind: input, shape index: {}]   ;;  %s4285_s10 = inlined_call_operand.hbm [shape: bf16[2,32,64], index: 10, kind: input, shape index: {}]   ;;  %s4286_s11 = inlined_call_operand.vmem [shape: f32[2,1,64], index: 11, kind: input, shape index: {}]   ;;  %s4287_s12 = inlined_call_operand.vmem [shape: bf16[2,64,32], index: 12, kind: input, shape index: {}]   ;;  %s4288_s13 = inlined_call_operand.hbm [shape: f32[2,1,32], index: 13, kind: input, shape index: {}]   ;;  %s4289_s14 = inlined_call_operand.hbm [shape: f32[2,2,32], index: 14, kind: input, shape index: {}]   ;;  %s4290_s15 = inlined_call_operand.vmem [shape: f32[32,128], index: 15, kind: input, shape index: {}]   ;;  %s4291_s16 = inlined_call_operand.hbm [shape: f32[1,128], index: 16, kind: input, shape index: {}]   ;;  %s4292_s17 = inlined_call_operand.vmem [shape: f32[16,128], index: 17, kind: output, shape index: {0}]   ;;  %s4293_s18 = inlined_call_operand.hbm [shape: f32[2,128], index: 18, kind: output, shape index: {1}]  }
   0x1   :  { %4300 = sst [smem:[#allocation26_spill]] %s4275_s0 }
   0x2   :  { %4301 = sst [smem:[#allocation27_spill]] %s4276_s1 }
   0x3   :  { %4302 = sst [smem:[#allocation28_spill]] %s4277_s2 }
   0x4   :  { %4303 = sst [smem:[#allocation29_spill]] %s4293_s18 }
   0x5   :  { %24 = vsyncpa [#allocation5], 0 }
   0x6   :  { %25 = vsyncpa [#allocation7], 0 }
   0x7   :  { %26 = vsyncpa [#allocation3], 0 }
   0x8   :  { %27 = vsyncpa [#allocation10], 0 }
   0x9   :  { %28 = vsyncpa [#allocation13], 0 }
   0xa   :  { %29 = vsyncpa [#allocation16], 0 }
   0xb   :  { %30 = vsyncpa [#allocation4], 0  ;;  %s3596_s27 = smov [#allocation9]   ;;  %s3386_s0 = scalar_lea.hbm %s4279_s4, 256 }
   0xc   :  { %s66_s28 = sshll.u32 %s3596_s27, 4  ;;  %p3387_p0 = scmp.ne.s32.totalorder %s4279_s4, %s3386_s0  ;;  %s67_s28 = int_to_ptr.vmem [resolvable:$true] %s66_s28 }
   0xd   :  { %p3390_p1 = scmp.lt.u32.totalorder %s3386_s0, %s4279_s4 }
   0xf   :  { %p3392_p2 = pnand %p3390_p1, %p3387_p0 }
  0x11   :  { %3395 = shalt.err (!%p3392_p2)
}
  0x12   :  { %s3396_s22 = scalar_lea.vmem %s67_s28, 256  ;;  %p3401_p4 = scmp.lt.s32.totalorder %s67_s28, %s67_s28 }
  0x13   :  { %p3397_p3 = scmp.ne.s32.totalorder %s67_s28, %s3396_s22  ;;  %p3402_p5 = scmp.lt.s32.totalorder %s3396_s22, %s3396_s22 }
  0x15   :  { %p3403_p6 = por %p3402_p5, %p3401_p4 }
  0x17   :  { %p3404_p7 = pnand %p3403_p6, %p3397_p3 }
  0x19   :  { %3407 = shalt.err (!%p3404_p7)
}
  0x1a   :  { %s3597_s2 = smov 128   ;;  %s3598_s23 = smov 8  }
  0x1b   :  { %72 = dma.hbm_to_vmem [thread:$0]  %s4279_s4, 256, %s67_s28, [#allocation10], %s3597_s2, %s3597_s2, %s3598_s23  }
  0x1c   :  { %s3599_s26 = smov [#allocation12]   ;;  %s3600_s29 = smov [#allocation15]  }
  0x1d   :  { %s98_s27 = sshll.u32 %s3599_s26, 4  ;;  %s126_s30 = sshll.u32 %s3600_s29, 4  ;;  %s99_s27 = int_to_ptr.vmem [resolvable:$true] %s98_s27  ;;  %s127_s30 = int_to_ptr.vmem [resolvable:$true] %s126_s30 }
  0x1e   :  { %s3408_s1 = scalar_lea.hbm %s4285_s10, 512 }
  0x1f   :  { %p3409_p8 = scmp.ne.s32.totalorder %s4285_s10, %s3408_s1  ;;  %p3412_p9 = scmp.lt.u32.totalorder %s3408_s1, %s4285_s10 }
  0x21   :  { %p3414_p10 = pnand %p3412_p9, %p3409_p8 }
  0x23   :  { %3417 = shalt.err (!%p3414_p10)
}
  0x24   :  { %s3418_s4 = scalar_lea.vmem %s99_s27, 512  ;;  %p3423_p12 = scmp.lt.s32.totalorder %s99_s27, %s99_s27 }
  0x25   :  { %p3419_p11 = scmp.ne.s32.totalorder %s99_s27, %s3418_s4  ;;  %p3424_p13 = scmp.lt.s32.totalorder %s3418_s4, %s3418_s4 }
  0x27   :  { %p3425_p0 = por %p3424_p13, %p3423_p12 }
  0x29   :  { %p3426_p1 = pnand %p3425_p0, %p3419_p11 }
  0x2b   :  { %3429 = shalt.err (!%p3426_p1)
}
  0x2c   :  { %s4298_s28 = smov 64   ;;  %s4299_s24 = smov 4  }
  0x2d   :  { %104 = dma.hbm_to_vmem [thread:$0]  %s4285_s10, 512, %s99_s27, [#allocation13], %s4298_s28, %s4298_s28, %s4299_s24  }
  0x2e   :  { %s3430_s0 = scalar_lea.hbm %s4289_s14, 64 }
  0x2f   :  { %p3431_p2 = scmp.ne.s32.totalorder %s4289_s14, %s3430_s0  ;;  %p3434_p3 = scmp.lt.u32.totalorder %s3430_s0, %s4289_s14 }
  0x31   :  { %p3436_p4 = pnand %p3434_p3, %p3431_p2 }
  0x33   :  { %3439 = shalt.err (!%p3436_p4)
}
  0x34   :  { %s3440_s22 = scalar_lea.vmem %s127_s30, 64  ;;  %p3445_p6 = scmp.lt.s32.totalorder %s127_s30, %s127_s30 }
  0x35   :  { %p3441_p5 = scmp.ne.s32.totalorder %s127_s30, %s3440_s22  ;;  %p3446_p7 = scmp.lt.s32.totalorder %s3440_s22, %s3440_s22 }
  0x37   :  { %p3447_p8 = por %p3446_p7, %p3445_p6 }
  0x39   :  { %p3448_p9 = pnand %p3447_p8, %p3441_p5 }
  0x3b   :  { %3451 = shalt.err (!%p3448_p9)
}
  0x3c   :  { %s3603_s10 = smov 32   ;;  %s3604_s27 = smov 2  }
  0x3d   :  { %132 = dma.hbm_to_vmem [thread:$0]  %s4289_s14, 64, %s127_s30, [#allocation16], %s3603_s10, %s3603_s10, %s3604_s27  }
  0x3e   :  { %s4304_s29 = sld [smem:[#allocation27_spill]] }
  0x44   :  { %s3452_s19 = scalar_lea.hbm %s4304_s29, 16 }
  0x45   :  { %p3453_p10 = scmp.ne.s32.totalorder %s4304_s29, %s3452_s19  ;;  %p3456_p11 = scmp.lt.u32.totalorder %s3452_s19, %s4304_s29 }
  0x47   :  { %p3458_p12 = pnand %p3456_p11, %p3453_p10 }
  0x49   :  { %3461 = shalt.err (!%p3458_p12)
}
  0x4a   :  { %s3605_s22 = smov [#allocation2]   ;;  %s4305_s10 = sld [smem:[#allocation28_spill]] }
  0x4b   :  { %40 = dma.hbm_to_smem %s4304_s29, 16, %s3605_s22, [#allocation5]  }
  0x50   :  { %s3462_s27 = scalar_lea.hbm %s4305_s10, 16 }
  0x51   :  { %p3463_p13 = scmp.ne.s32.totalorder %s4305_s10, %s3462_s27  ;;  %p3466_p0 = scmp.lt.u32.totalorder %s3462_s27, %s4305_s10 }
  0x53   :  { %p3468_p1 = pnand %p3466_p0, %p3463_p13 }
  0x55   :  { %3471 = shalt.err (!%p3468_p1)
}
  0x56   :  { %s3606_s19 = smov [#allocation6]   ;;  %s3607_s28 = smov [#allocation8]  }
  0x57   :  { %48 = dma.hbm_to_smem %s4305_s10, 16, %s3606_s19, [#allocation7]  }
  0x58   :  { %s54_s24 = sshll.u32 %s3607_s28, 4  ;;  %s3608_s29 = smov [#allocation11]   ;;  %s55_s24 = int_to_ptr.vmem [resolvable:$true] %s54_s24 }
  0x59   :  { %s82_s20 = sshll.u32 %s3608_s29, 4  ;;  %s3472_s14 = scalar_lea.hbm %s4278_s3, 256  ;;  %s83_s20 = int_to_ptr.vmem [resolvable:$true] %s82_s20 }
  0x5a   :  { %p3473_p2 = scmp.ne.s32.totalorder %s4278_s3, %s3472_s14  ;;  %p3476_p3 = scmp.lt.u32.totalorder %s3472_s14, %s4278_s3 }
  0x5c   :  { %p3478_p4 = pnand %p3476_p3, %p3473_p2 }
  0x5e   :  { %3481 = shalt.err (!%p3478_p4)
}
  0x5f   :  { %s3482_s10 = scalar_lea.vmem %s55_s24, 256  ;;  %p3487_p6 = scmp.lt.s32.totalorder %s55_s24, %s55_s24 }
  0x60   :  { %p3483_p5 = scmp.ne.s32.totalorder %s55_s24, %s3482_s10  ;;  %p3488_p7 = scmp.lt.s32.totalorder %s3482_s10, %s3482_s10 }
  0x62   :  { %p3489_p8 = por %p3488_p7, %p3487_p6 }
  0x64   :  { %p3490_p9 = pnand %p3489_p8, %p3483_p5 }
  0x66   :  { %3493 = shalt.err (!%p3490_p9)
}
  0x67   :  { %60 = dma.hbm_to_vmem [thread:$0]  %s4278_s3, 256, %s55_s24, [#allocation3], %s3597_s2, %s3597_s2, %s3598_s23  }
  0x68   :  { %s3494_s1 = scalar_lea.hbm %s4282_s7, 512 }
  0x69   :  { %p3495_p10 = scmp.ne.s32.totalorder %s4282_s7, %s3494_s1  ;;  %p3498_p11 = scmp.lt.u32.totalorder %s3494_s1, %s4282_s7 }
  0x6b   :  { %p3500_p12 = pnand %p3498_p11, %p3495_p10 }
  0x6d   :  { %3503 = shalt.err (!%p3500_p12)
}
  0x6e   :  { %s3504_s14 = scalar_lea.vmem %s83_s20, 512  ;;  %p3509_p0 = scmp.lt.s32.totalorder %s83_s20, %s83_s20 }
  0x6f   :  { %p3505_p13 = scmp.ne.s32.totalorder %s83_s20, %s3504_s14  ;;  %p3510_p1 = scmp.lt.s32.totalorder %s3504_s14, %s3504_s14 }
  0x71   :  { %p3511_p2 = por %p3510_p1, %p3509_p0 }
  0x73   :  { %p3512_p3 = pnand %p3511_p2, %p3505_p13 }
  0x75   :  { %3515 = shalt.err (!%p3512_p3)
}
  0x76   :  { %s4306_s3 = smov 4   ;;  %s4307_s2 = smov 64  }
  0x77   :  { %88 = dma.hbm_to_vmem [thread:$0]  %s4282_s7, 512, %s83_s20, [#allocation10], %s4307_s2, %s4307_s2, %s4306_s3  }
  0x78   :  { %s3609_s4 = smov [#allocation14]   ;;  %s3516_s26 = scalar_lea.hbm %s4288_s13, 32 }
  0x79   :  { %s114_s27 = sshll.u32 %s3609_s4, 4  ;;  %p3517_p4 = scmp.ne.s32.totalorder %s4288_s13, %s3516_s26  ;;  %s115_s27 = int_to_ptr.vmem [resolvable:$true] %s114_s27 }
  0x7a   :  { %p3520_p5 = scmp.lt.u32.totalorder %s3516_s26, %s4288_s13 }
  0x7c   :  { %p3522_p6 = pnand %p3520_p5, %p3517_p4 }
  0x7e   :  { %3525 = shalt.err (!%p3522_p6)
}
  0x7f   :  { %s3526_s28 = scalar_lea.vmem %s115_s27, 32  ;;  %p3531_p8 = scmp.lt.s32.totalorder %s115_s27, %s115_s27 }
  0x80   :  { %p3527_p7 = scmp.ne.s32.totalorder %s115_s27, %s3526_s28  ;;  %p3532_p9 = scmp.lt.s32.totalorder %s3526_s28, %s3526_s28 }
  0x82   :  { %p3533_p10 = por %p3532_p9, %p3531_p8 }
  0x84   :  { %p3534_p11 = pnand %p3533_p10, %p3527_p7 }
  0x86   :  { %3537 = shalt.err (!%p3534_p11)
}
  0x87   :  { %s3610_s7 = smov 16   ;;  %s3611_s20 = smov 1  }
  0x88   :  { %120 = dma.hbm_to_vmem [thread:$0]  %s4288_s13, 32, %s115_s27, [#allocation13], %s3610_s7, %s3610_s7, %s3611_s20  }
  0x89   :  { %s3612_s22 = smov [#allocation17]   ;;  %s3538_s24 = scalar_lea.hbm %s4291_s16, 16 }
  0x8a   :  { %s141_s14 = sshll.u32 %s3612_s22, 4  ;;  %p3539_p12 = scmp.ne.s32.totalorder %s4291_s16, %s3538_s24  ;;  %s142_s14 = int_to_ptr.vmem [resolvable:$true] %s141_s14 }
  0x8b   :  { %p3542_p13 = scmp.lt.u32.totalorder %s3538_s24, %s4291_s16 }
  0x8d   :  { %p3544_p0 = pnand %p3542_p13, %p3539_p12 }
  0x8f   :  { %3547 = shalt.err (!%p3544_p0)
}
  0x90   :  { %s3548_s26 = scalar_lea.vmem %s142_s14, 16  ;;  %s3552_s13 = scalar_lea.vmem %s142_s14, 32 }
  0x91   :  { %p3549_p1 = scmp.ne.s32.totalorder %s142_s14, %s3548_s26  ;;  %p3553_p2 = scmp.lt.s32.totalorder %s142_s14, %s142_s14 }
  0x92   :  { %p3554_p3 = scmp.lt.s32.totalorder %s3552_s13, %s3548_s26 }
  0x94   :  { %p3555_p4 = por %p3554_p3, %p3553_p2 }
  0x96   :  { %p3556_p5 = pnand %p3555_p4, %p3549_p1 }
  0x98   :  { %3559 = shalt.err (!%p3556_p5)
}
  0x99   :  { %144 = dma.hbm_to_vmem [thread:$0]  %s4291_s16, 16, %s142_s14, [#allocation16]  }
  0x9a   :  { %3582 = dma.done.wait [#allocation5], 16  }
  0x9b   :  { %3583 = vsyncadd [#allocation5], 4294967280 }
  0x9c   :  { %3584 = dma.done.wait [#allocation7], 16  }
  0x9d   :  { %3585 = vsyncadd [#allocation7], 4294967280 }
  0x9e   :  { %3586 = dma.done.wait [#allocation3], 256  }
  0x9f   :  { %3587 = vsyncadd [#allocation3], 4294967040 }
  0xa0   :  { %3588 = dma.done.wait [#allocation10], 768  }
  0xa1   :  { %3589 = vsyncadd [#allocation10], 4294966528 }
  0xa2   :  { %3590 = dma.done.wait [#allocation13], 544  }
  0xa3   :  { %3591 = vsyncadd [#allocation13], 4294966752 }
  0xa4   :  { %3592 = dma.done.wait [#allocation16], 80  }
  0xa5   :  { %3593 = vsyncadd [#allocation16], 4294967216 }
  0xa6   :  { %172 = sfence }
  0xa7   :  { %s4308_s1 = sld [smem:[#allocation26_spill]]  ;;  %v3613_v1 = vmov 0   ;;  %v190_v2 = vld [vmem:[#allocation8] sm:$0xff]  ;;  %v191_v3 = vld [vmem:[#allocation8 + $0x8] sm:$0xff]  ;;  %v3614_v6 = vmov 0.0   ;;  %v176_v8 = vlaneseq  ;;  %vm194_vm0 = vcmask 130048  }
  0xa8   :  { %3157 = vset.pattern.permute.xlu0 %v3613_v1  ;;  %v3117_v4 = vpack.c.bf16 %v191_v3, %v190_v2  ;;  %2899 = vmatprep.subr.bf16.mxu1 %v3614_v6  ;;  %v3278_v7 = vld [vmem:[%s4280_s5] sm:$0xff]   ;;  %v3279_v13 = vld [vmem:[%s4280_s5 + $0x10] sm:$0xff]   ;;  %v3280_v15 = vld [vmem:[%s4280_s5 + $0x8] sm:$0xff]   ;;  %vm3615_vm3 = vmmov 0   ;;  %vm334_vm4 = vcmask 261120   ;;  %vm583_vm5 = vcmask 64512  }
  0xa9   :  { %2900 = vmatpush3.bf16.msra.mxu1 %v3278_v7  ;;  %v3852_v9 = vand.u32 127, %v176_v8  ;;  %v3281_v16 = vld [vmem:[%s4280_s5 + $0x18] sm:$0xff]   ;;  %2903 = vmatprep.mubr.msk.bf16.mxu1 %vm3615_vm3, %v3614_v6  ;;  %v192_v18 = vld [vmem:[#allocation9] sm:$0xff]  ;;  %v3282_v23 = vld [vmem:[%s4280_s5 + $0x20] sm:$0xff]   ;;  %s3616_s19 = smov 120   ;;  %s3617_s16 = smov 112  }
  0xaa   :  { %3118 = vmatprep.subr.bf16.mxu0 %v3117_v4  ;;  %2901 = vmatprep.subr.bf16.mxu1 %v3614_v6  ;;  %v193_v17 = vld [vmem:[#allocation9 + $0x8] sm:$0xff]  ;;  %v3283_v25 = vld [vmem:[%s4280_s5 + $0x28] sm:$0xff]   ;;  %v2689_v26 = vld [vmem:[%s4281_s6] ss:$0 sm:$0xff]  ;;  %s3618_s28 = smov 104   ;;  %s2688_s20 = sld [smem:[#allocation2 + $0x1]] }
  0xab   :  { %3120 = vmatpush3.bf16.msra.mxu0 %v3117_v4  ;;  %v2698_v28 = vld [vmem:[%s4281_s6 + $0x1] ss:$0 sm:$0xff]  ;;  %v2707_v45 = vld [vmem:[%s4281_s6 + $0x2] ss:$0 sm:$0xff]  ;;  %s286_s29 = sld [smem:[#allocation2]]  ;;  %vm298_vm6 = vcmp.ge.s32.totalorder %v3852_v9, 8 }
  0xac   :  { %2907 = vmatprep.subr.bf16.mxu0 %v3614_v6  ;;  %s3620_s22 = smov 24   ;;  %vm1084_vm10 = vcmask 195584   ;;  %vm1308_vm11 = vcmask 523264   ;;  %vm2500_vm14 = vcmask 1040384  }
  0xad   :  { %v174_v0 = vld [vmem:[%s4308_s1] sm:$0xff]  ;;  %v175_v5 = vld [vmem:[%s4308_s1 + $0x8] sm:$0xff]  ;;  %2902 = vmatpush3.bf16.msra.mxu1 %v3280_v15 }
  0xae   :  { %179 = vperm.xlu0 %3157, %v174_v0   ;;  %2915 = vmatprep.subr.bf16.mxu1 %v3614_v6 }
  0xb0   :  { %s300_s21 = sadd.s32 8, %s2688_s20 }
  0xb2   :  { %182 = vperm.xlu0 %3157, %v175_v5  }
 0x12d   :  { %v180_v10 = vpop.permute.xlu0 %179 }
 0x12e   :  { %vm184_vm1 = vcmp.eq.s32.totalorder %v3852_v9, %v180_v10 }
 0x12f   :  { %v2684_v11 = vsel %vm184_vm1, 1.0, %v3614_v6 }
 0x130   :  { %2896 = vmatprep.mubr.msk.f32.mxu0 %vm194_vm0, %v2684_v11 }
 0x131   :  { %v183_v12 = vpop.permute.xlu0 %182 }
 0x132   :  { %vm185_vm2 = vcmp.eq.s32.totalorder %v3852_v9, %v183_v12 }
 0x133   :  { %v2685_v14 = vsel %vm185_vm2, 1.0, %v3614_v6 }
 0x134   :  { %2897 = vmatmul.mubr.msk.f32.vlgmr.msra.gmra.mrb[0].mxu0 %vm194_vm0, %v2685_v14 }
 0x135   :  { %2908 = vmatpush3.bf16.msra.mxu0 %v3279_v13  ;;  %2911 = vmatprep.mubr.msk.bf16.mxu0 %vm3615_vm3, %v3614_v6 }
 0x136   :  { %2909 = vmatprep.subr.bf16.mxu0 %v3614_v6 }
 0x139   :  { %2910 = vmatpush3.bf16.msra.mxu0 %v3281_v16 }
 0x13a   :  { %2923 = vmatprep.subr.bf16.mxu0 %v3614_v6 }
 0x207   :  { %v2898_v19 = vpop.f32.mrb[0].mxu0 }
 0x208   :  { %v3876_v20 = vadd.f32 %v2898_v19, %v193_v17  ;;  %v267_v21 = vpop.f32.mrb[1].mxu0  ;;  %v301_v19 = vstv %s300_s21 }
 0x209   :  { %v3878_v22 = vadd.f32 %v267_v21, %v192_v18  ;;  %v287_v21 = vstv %s286_s29  ;;  %vm302_vm7 = vcmp.lt.s32.totalorder %v3852_v9, %v301_v19 }
 0x20a   :  { %vm288_vm8 = vcmp.lt.s32.totalorder %v3852_v9, %v287_v21  ;;  %vm303_vm9 = vmand %vm298_vm6, %vm302_vm7 }
 0x20b   :  { %v310_v24 = vpack.c.bf16 %v3876_v20, %v3878_v22 }
 0x20d   :  { %2904 = vmatmul.mubr.msk.bf16.vlgmr.msra.gmra.mrb[0].mxu1 %vm334_vm4, %v310_v24  ;;  %2912 = vmatmul.mubr.msk.bf16.vlgmr.msra.gmra.mrb[4].mxu0 %vm334_vm4, %v310_v24 }
 0x20e   :  { %2916 = vmatpush3.bf16.msra.mxu1 %v3282_v23  ;;  %2919 = vmatprep.mubr.msk.bf16.mxu1 %vm3615_vm3, %v3614_v6 }
 0x20f   :  { %2917 = vmatprep.subr.bf16.mxu1 %v3614_v6  ;;  %2925 = vmatprep.mubr.msk.bf16.mxu0 %vm3615_vm3, %v3614_v6 }
 0x212   :  { %2918 = vmatpush3.bf16.msra.mxu1 %v3283_v25 }
 0x213   :  { %2929 = vmatprep.subr.bf16.mxu1 %v3614_v6 }
 0x215   :  { %2920 = vmatmul.mubr.msk.bf16.vlgmr.msra.gmra.mrb[4].mxu1 %vm334_vm4, %v310_v24  ;;  %v3619_v24 = vmov -1e+09  }
 0x216   :  { %2931 = vmatprep.mubr.msk.bf16.mxu1 %vm3615_vm3, %v3614_v6  ;;  %v3940_v25 = vsel %vm288_vm8, 0.0, %v3619_v24 }
 0x2e0   :  { %v372_v27 = vpop.f32.mrb[0].mxu1  ;;  %v438_v29 = vpop.f32.mrb[4].mxu0 }
 0x2e1   :  { %v2905_v30 = vpop.f32.mrb[1].mxu1  ;;  %v2913_v31 = vpop.f32.mrb[5].mxu0  ;;  %v373_v34 = vadd.f32 %v2689_v26, %v372_v27  ;;  %v439_v35 = vadd.f32 %v2698_v28, %v438_v29  ;;  %v3942_v29 = vsel %vm303_vm9, 0.0, %v3619_v24 }
 0x2e2   :  { %v375_v32 = vpop.f32.mrb[2].mxu1  ;;  %v441_v33 = vpop.f32.mrb[6].mxu0 }
 0x2e3   :  { %v376_v36 = vadd.f32 %v2689_v26, %v375_v32  ;;  %v442_v37 = vadd.f32 %v2698_v28, %v441_v33  ;;  %v2906_v38 = vpop.f32.mrb[3].mxu1  ;;  %v2914_v39 = vpop.f32.mrb[7].mxu0 }
 0x2e5   :  { %v531_v40 = vpack.c.bf16 %v376_v36, %v373_v34  ;;  %v3158_v41 = vpack.i.bf16 %v442_v37, %v439_v35  ;;  %v3168_v42 = vpack.i.bf16 %v376_v36, %v373_v34  ;;  %v555_v43 = vpack.c.bf16 %v442_v37, %v439_v35 }
 0x2e7   :  { %3159 = vrot.lane.b32.xlu1 %v3158_v41, %s3616_s19  ;;  %3169 = vrot.lane.b32.xlu0 %v3168_v42, %s3616_s19  ;;  %v588_v44 = vsel %vm583_vm5, %v555_v43, 0 }
 0x2e8   :  { %v504_v46 = vpop.f32.mrb[4].mxu1  ;;  %2924 = vmatpush3.bf16.xpose.msra.mxu0 %v588_v44 }
 0x2e9   :  { %v2921_v47 = vpop.f32.mrb[5].mxu1  ;;  %2935 = vmatprep.subr.bf16.mxu0 %v3614_v6  ;;  %v505_v49 = vadd.f32 %v2707_v45, %v504_v46 }
 0x2ea   :  { %v507_v48 = vpop.f32.mrb[6].mxu1 }
 0x2eb   :  { %v508_v50 = vadd.f32 %v2707_v45, %v507_v48  ;;  %3164 = vrot.lane.b32.xlu1 %v3158_v41, %s3617_s16  ;;  %3179 = vrot.lane.b32.xlu0 %v3168_v42, %s3617_s16  ;;  %v2922_v51 = vpop.f32.mrb[7].mxu1 }
 0x2ed   :  { %v579_v52 = vpack.c.bf16 %v508_v50, %v505_v49  ;;  %v3914_v53 = vpack.i.bf16 %v508_v50, %v505_v49 }
 0x2ef   :  { %3174 = vrot.lane.b32.xlu1 %v3158_v41, %s3618_s28  ;;  %2926 = vmatmul.mubr.msk.bf16.vlgmr.msra.gmra.mrb[8].mxu0 %vm583_vm5, %v531_v40 }
 0x2f0   :  { %2937 = vmatprep.mubr.msk.bf16.mxu0 %vm3615_vm3, %v3614_v6 }
 0x2f3   :  { %3184 = vrot.lane.b32.xlu1 %v3168_v42, %s3618_s28 }
 0x359   :  { %v3160_v54 = vpop.permute.xlu1 %3159  ;;  %v3170_v57 = vpop.permute.xlu0 %3169 }
 0x35a   :  { %v3162_v55 = vunpack.i.h.bf16 %v3160_v54  ;;  %v3161_v56 = vunpack.i.l.bf16 %v3160_v54  ;;  %v3172_v0 = vunpack.i.h.bf16 %v3170_v57  ;;  %v3171_v1 = vunpack.i.l.bf16 %v3170_v57 }
 0x35c   :  { %v556_v58 = vpack.c.bf16 %v3162_v55, %v3161_v56  ;;  %v532_v12 = vpack.c.bf16 %v3172_v0, %v3171_v1 }
 0x35d   :  { %v3165_v59 = vpop.permute.xlu1 %3164  ;;  %v3180_v2 = vpop.permute.xlu0 %3179 }
 0x35e   :  { %v3167_v60 = vunpack.i.h.bf16 %v3165_v59  ;;  %v3166_v61 = vunpack.i.l.bf16 %v3165_v59  ;;  %v635_v62 = vsel %vm583_vm5, %v556_v58, 0  ;;  %v3182_v8 = vunpack.i.h.bf16 %v3180_v2 }
 0x35f   :  { %2930 = vmatpush3.bf16.xpose.msra.mxu1 %v635_v62  ;;  %v3181_v10 = vunpack.i.l.bf16 %v3180_v2 }
 0x360   :  { %v557_v63 = vpack.c.bf16 %v3167_v60, %v3166_v61  ;;  %2941 = vmatprep.subr.bf16.mxu1 %v3614_v6 }
 0x361   :  { %v3175_v3 = vpop.permute.xlu1 %3174  ;;  %v533_v15 = vpack.c.bf16 %v3182_v8, %v3181_v10 }
 0x362   :  { %v3177_v4 = vunpack.i.h.bf16 %v3175_v3  ;;  %v3176_v5 = vunpack.i.l.bf16 %v3175_v3  ;;  %v682_v7 = vsel %vm583_vm5, %v557_v63, 0 }
 0x363   :  { %2936 = vmatpush3.bf16.xpose.msra.mxu0 %v682_v7 }
 0x364   :  { %v558_v11 = vpack.c.bf16 %v3177_v4, %v3176_v5  ;;  %2947 = vmatprep.subr.bf16.mxu0 %v3614_v6 }
 0x365   :  { %v3185_v13 = vpop.permute.xlu1 %3184 }
 0x366   :  { %v729_v14 = vsel %vm583_vm5, %v558_v11, 0  ;;  %2932 = vmatmul.mubr.msk.bf16.vlgmr.msra.gmra.mrb[8].mxu1 %vm583_vm5, %v532_v12  ;;  %v3187_v16 = vunpack.i.h.bf16 %v3185_v13  ;;  %v3186_v17 = vunpack.i.l.bf16 %v3185_v13 }
 0x367   :  { %2942 = vmatpush3.bf16.xpose.msra.mxu1 %v729_v14  ;;  %2943 = vmatprep.mubr.msk.bf16.mxu1 %vm3615_vm3, %v3614_v6 }
 0x368   :  { %2953 = vmatprep.subr.bf16.mxu1 %v3614_v6  ;;  %v534_v18 = vpack.c.bf16 %v3187_v16, %v3186_v17 }
 0x36a   :  { %2938 = vmatmul.mubr.msk.bf16.vlgmr.msra.gmra.mrb[12].mxu0 %vm583_vm5, %v533_v15 }
 0x36b   :  { %2948 = vmatpush3.bf16.msra.mxu0 %v579_v52  ;;  %2949 = vmatprep.mubr.msk.bf16.mxu0 %vm3615_vm3, %v3614_v6 }
 0x36c   :  { %2959 = vmatprep.subr.bf16.mxu0 %v3614_v6 }
 0x36e   :  { %2944 = vmatmul.mubr.msk.bf16.vlgmr.msra.gmra.mrb[12].mxu1 %vm583_vm5, %v534_v18 }
 0x36f   :  { %2955 = vmatprep.mubr.msk.bf16.mxu1 %vm3615_vm3, %v3614_v6 }
 0x3c2   :  { %v624_v23 = vpop.f32.mrb[8].mxu0 }
 0x3c3   :  { %v772_v26 = vmul.f32 0.35355338, %v624_v23  ;;  %v2927_v27 = vpop.f32.mrb[9].mxu0 }
 0x3c4   :  { %v627_v28 = vpop.f32.mrb[10].mxu0 }
 0x3c5   :  { %v773_v30 = vmul.f32 0.35355338, %v627_v28  ;;  %v2928_v31 = vpop.f32.mrb[11].mxu0  ;;  %v780_v32 = vadd.f32 %v772_v26, %v3940_v25 }
 0x3c7   :  { %v788_v33 = vsel %vm194_vm0, %v780_v32, -inf  ;;  %v781_v34 = vadd.f32 %v773_v30, %v3942_v29 }
 0x3c8   :  { %789 = vmax.xlane.f32.xlu0 %v788_v33 }
 0x3c9   :  { %v791_v35 = vsel %vm194_vm0, %v781_v34, -inf }
 0x3ca   :  { %792 = vmax.xlane.f32.xlu1 %v791_v35 }
 0x439   :  { %v671_v36 = vpop.f32.mrb[8].mxu1 }
 0x43a   :  { %v774_v37 = vmul.f32 0.35355338, %v671_v36  ;;  %v2933_v38 = vpop.f32.mrb[9].mxu1 }
 0x43b   :  { %v674_v39 = vpop.f32.mrb[10].mxu1 }
 0x43c   :  { %v775_v40 = vmul.f32 0.35355338, %v674_v39  ;;  %v2934_v41 = vpop.f32.mrb[11].mxu1  ;;  %v782_v43 = vadd.f32 %v774_v37, %v3940_v25 }
 0x43d   :  { %v718_v42 = vpop.f32.mrb[12].mxu0 }
 0x43e   :  { %v776_v44 = vmul.f32 0.35355338, %v718_v42  ;;  %v2939_v45 = vpop.f32.mrb[13].mxu0  ;;  %v794_v47 = vsel %vm194_vm0, %v782_v43, -inf  ;;  %v783_v48 = vadd.f32 %v775_v40, %v3942_v29 }
 0x43f   :  { %v721_v46 = vpop.f32.mrb[14].mxu0  ;;  %795 = vmax.xlane.f32.xlu0 %v794_v47 }
 0x440   :  { %v777_v49 = vmul.f32 0.35355338, %v721_v46  ;;  %v2940_v50 = vpop.f32.mrb[15].mxu0  ;;  %v784_v51 = vadd.f32 %v776_v44, %v3940_v25  ;;  %v797_v57 = vsel %vm194_vm0, %v783_v48, -inf }
 0x441   :  { %v765_v52 = vpop.f32.mrb[12].mxu1 }
 0x442   :  { %v800_v54 = vsel %vm194_vm0, %v784_v51, -inf  ;;  %v778_v55 = vmul.f32 0.35355338, %v765_v52  ;;  %v2945_v56 = vpop.f32.mrb[13].mxu1  ;;  %v785_v58 = vadd.f32 %v777_v49, %v3942_v29 }
 0x443   :  { %801 = vmax.xlane.f32.xlu1 %v800_v54  ;;  %798 = vmax.xlane.f32.xlu0 %v797_v57  ;;  %v768_v59 = vpop.f32.mrb[14].mxu1 }
 0x444   :  { %v779_v60 = vmul.f32 0.35355338, %v768_v59  ;;  %v2946_v61 = vpop.f32.mrb[15].mxu1  ;;  %v786_v62 = vadd.f32 %v778_v55, %v3940_v25  ;;  %v803_v63 = vsel %vm194_vm0, %v785_v58, -inf }
 0x446   :  { %v806_v0 = vsel %vm194_vm0, %v786_v62, -inf  ;;  %v787_v1 = vadd.f32 %v779_v60, %v3942_v29 }
 0x447   :  { %804 = vmax.xlane.f32.xlu0 %v803_v63  ;;  %807 = vmax.xlane.f32.xlu1 %v806_v0 }
 0x448   :  { %v809_v2 = vsel %vm194_vm0, %v787_v1, -inf }
 0x44b   :  { %810 = vmax.xlane.f32.xlu0 %v809_v2 }
 0x455   :  { %v790_v7 = vpop.xlane.xlu0 %789 }
 0x456   :  { %v812_v10 = vsub.f32 %v780_v32, %v790_v7 }
 0x457   :  { %v793_v3 = vpop.xlane.xlu1 %792 }
 0x458   :  { %v813_v4 = vsub.f32 %v781_v34, %v793_v3  ;;  %3189 = vrot.lane.b32.xlu1 %v3914_v53, %s3616_s19  ;;  %v820_v12 = vmul.f32 1.442695, %v812_v10 }
 0x45a   :  { %v822_v5 = vmul.f32 1.442695, %v813_v4 }
 0x45c   :  { %3306 = vpow2.f32 %v822_v5 }
 0x45d   :  { %3308 = vpow2.f32 %v820_v12 }
 0x466   :  { %v3962_v8 = vpop.eup %3306 }
 0x467   :  { %v839_v11 = vsel %vm194_vm0, %v3962_v8, 0.0  ;;  %v3309_v13 = vpop.eup %3308 }
 0x468   :  { %840 = vadd.xlane.f32.xlu0 %v839_v11  ;;  %v836_v14 = vsel %vm194_vm0, %v3309_v13, 0.0 }
 0x47c   :  { %837 = vadd.xlane.f32.xlu1 %v836_v14 }
 0x4cc   :  { %v796_v15 = vpop.xlane.xlu0 %795 }
 0x4cd   :  { %v814_v16 = vsub.f32 %v782_v43, %v796_v15 }
 0x4cf   :  { %v824_v17 = vmul.f32 1.442695, %v814_v16 }
 0x4d0   :  { %v802_v18 = vpop.xlane.xlu1 %801  ;;  %v799_v21 = vpop.xlane.xlu0 %798 }
 0x4d1   :  { %v816_v19 = vsub.f32 %v784_v51, %v802_v18  ;;  %3310 = vpow2.f32 %v824_v17  ;;  %v815_v23 = vsub.f32 %v783_v48, %v799_v21 }
 0x4d3   :  { %v828_v24 = vmul.f32 1.442695, %v816_v19  ;;  %v826_v26 = vmul.f32 1.442695, %v815_v23 }
 0x4d4   :  { %v805_v27 = vpop.xlane.xlu0 %804  ;;  %v808_v28 = vpop.xlane.xlu1 %807 }
 0x4d5   :  { %3312 = vpow2.f32 %v828_v24  ;;  %v817_v30 = vsub.f32 %v785_v58, %v805_v27  ;;  %v818_v31 = vsub.f32 %v786_v62, %v808_v28 }
 0x4d6   :  { %3314 = vpow2.f32 %v826_v26 }
 0x4d7   :  { %v830_v32 = vmul.f32 1.442695, %v817_v30  ;;  %v832_v33 = vmul.f32 1.442695, %v818_v31 }
 0x4d8   :  { %v3190_v34 = vpop.permute.xlu1 %3189  ;;  %v811_v35 = vpop.xlane.xlu0 %810 }
 0x4d9   :  { %3316 = vpow2.f32 %v830_v32  ;;  %v3192_v36 = vunpack.i.h.bf16 %v3190_v34  ;;  %v3191_v37 = vunpack.i.l.bf16 %v3190_v34  ;;  %v819_v38 = vsub.f32 %v787_v1, %v811_v35  ;;  %v3284_v35 = vld [vmem:[#allocation11] sm:$0xff]  }
 0x4da   :  { %3318 = vpow2.f32 %v832_v33 }
 0x4db   :  { %v3311_v39 = vpop.eup %3310  ;;  %v580_v40 = vpack.c.bf16 %v3192_v36, %v3191_v37  ;;  %v834_v41 = vmul.f32 1.442695, %v819_v38  ;;  %v3285_v38 = vld [vmem:[#allocation11 + $0x8] sm:$0xff]  }
 0x4dc   :  { %v842_v42 = vsel %vm194_vm0, %v3311_v39, 0.0 }
 0x4dd   :  { %3320 = vpow2.f32 %v834_v41  ;;  %843 = vadd.xlane.f32.xlu1 %v842_v42  ;;  %2954 = vmatpush3.bf16.msra.mxu1 %v580_v40 }
 0x4de   :  { %2965 = vmatprep.subr.bf16.mxu1 %v3614_v6 }
 0x4df   :  { %v3313_v43 = vpop.eup %3312 }
 0x4e0   :  { %v3315_v44 = vpop.eup %3314  ;;  %v848_v45 = vsel %vm194_vm0, %v3313_v43, 0.0 }
 0x4e1   :  { %v845_v46 = vsel %vm194_vm0, %v3315_v44, 0.0  ;;  %849 = vadd.xlane.f32.xlu1 %v848_v45 }
 0x4e2   :  { %846 = vadd.xlane.f32.xlu0 %v845_v46 }
 0x4e3   :  { %v3317_v47 = vpop.eup %3316 }
 0x4e4   :  { %v3319_v48 = vpop.eup %3318  ;;  %v851_v49 = vsel %vm194_vm0, %v3317_v47, 0.0 }
 0x4e5   :  { %v854_v50 = vsel %vm194_vm0, %v3319_v48, 0.0 }
 0x4e6   :  { %852 = vadd.xlane.f32.xlu0 %v851_v49  ;;  %855 = vadd.xlane.f32.xlu1 %v854_v50 }
 0x4e7   :  { %v3321_v51 = vpop.eup %3320 }
 0x4e8   :  { %v857_v52 = vsel %vm194_vm0, %v3321_v51, 0.0 }
 0x4ea   :  { %858 = vadd.xlane.f32.xlu0 %v857_v52 }
 0x4f5   :  { %v841_v54 = vpop.xlane.xlu0 %840 }
 0x4f6   :  { %3322 = vrcp.f32 %v841_v54 }
 0x4f7   :  { %3199 = vrot.lane.b32.xlu1 %v3914_v53, %s3618_s28 }
 0x500   :  { %3194 = vrot.lane.b32.xlu0 %v3914_v53, %s3617_s16  ;;  %v3323_v56 = vpop.eup %3322 }
 0x501   :  { %v869_v58 = vmul.f32 %v3323_v56, %v3962_v8 }
 0x509   :  { %v838_v55 = vpop.xlane.xlu1 %837 }
 0x50a   :  { %3324 = vrcp.f32 %v838_v55 }
 0x514   :  { %v3325_v57 = vpop.eup %3324 }
 0x515   :  { %v868_v59 = vmul.f32 %v3325_v57, %v3309_v13 }
 0x517   :  { %v876_v60 = vpack.c.bf16 %v869_v58, %v868_v59 }
 0x519   :  { %2950 = vmatmul.mubr.msk.bf16.vlgmr.msra.gmra.mrb[16].mxu0 %vm194_vm0, %v876_v60 }
 0x51a   :  { %2961 = vmatprep.mubr.msk.bf16.mxu0 %vm3615_vm3, %v3614_v6 }
 0x56a   :  { %v844_v61 = vpop.xlane.xlu1 %843 }
 0x56b   :  { %3326 = vrcp.f32 %v844_v61 }
 0x56e   :  { %v850_v62 = vpop.xlane.xlu1 %849 }
 0x56f   :  { %v847_v63 = vpop.xlane.xlu0 %846 }
 0x570   :  { %3328 = vrcp.f32 %v847_v63 }
 0x571   :  { %3330 = vrcp.f32 %v850_v62 }
 0x573   :  { %v853_v53 = vpop.xlane.xlu0 %852  ;;  %v856_v0 = vpop.xlane.xlu1 %855 }
 0x574   :  { %3332 = vrcp.f32 %v853_v53 }
 0x575   :  { %3334 = vrcp.f32 %v856_v0  ;;  %v3327_v3 = vpop.eup %3326 }
 0x576   :  { %v870_v11 = vmul.f32 %v3327_v3, %v3311_v39 }
 0x577   :  { %v859_v1 = vpop.xlane.xlu0 %858  ;;  %v3200_v2 = vpop.permute.xlu1 %3199 }
 0x578   :  { %3336 = vrcp.f32 %v859_v1  ;;  %v3202_v5 = vunpack.i.h.bf16 %v3200_v2  ;;  %v3201_v7 = vunpack.i.l.bf16 %v3200_v2 }
 0x57a   :  { %v3329_v4 = vpop.eup %3328  ;;  %v582_v21 = vpack.c.bf16 %v3202_v5, %v3201_v7 }
 0x57b   :  { %v3195_v8 = vpop.permute.xlu0 %3194  ;;  %v3331_v10 = vpop.eup %3330  ;;  %v871_v12 = vmul.f32 %v3329_v4, %v3315_v44  ;;  %v2719_v4 = vld [vmem:[%s4283_s8] ss:$0 sm:$0xff] }
 0x57c   :  { %v3197_v13 = vunpack.i.h.bf16 %v3195_v8  ;;  %v3196_v14 = vunpack.i.l.bf16 %v3195_v8  ;;  %v872_v18 = vmul.f32 %v3331_v10, %v3313_v43 }
 0x57d   :  { %v877_v17 = vpack.c.bf16 %v871_v12, %v870_v11 }
 0x57e   :  { %v3333_v15 = vpop.eup %3332  ;;  %v581_v16 = vpack.c.bf16 %v3197_v13, %v3196_v14 }
 0x57f   :  { %v873_v19 = vmul.f32 %v3333_v15, %v3317_v47  ;;  %v3335_v23 = vpop.eup %3334  ;;  %2956 = vmatmul.mubr.msk.bf16.vlgmr.msra.gmra.mrb[16].mxu1 %vm194_vm0, %v877_v17 }
 0x580   :  { %2960 = vmatpush3.bf16.msra.mxu0 %v581_v16  ;;  %2966 = vmatpush3.bf16.msra.mxu1 %v582_v21  ;;  %v874_v27 = vmul.f32 %v3335_v23, %v3319_v48 }
 0x581   :  { %v878_v24 = vpack.c.bf16 %v873_v19, %v872_v18  ;;  %2967 = vmatprep.mubr.msk.bf16.mxu1 %vm3615_vm3, %v3614_v6  ;;  %2971 = vmatprep.subr.bf16.mxu0 %v3614_v6 }
 0x582   :  { %v3337_v26 = vpop.eup %3336  ;;  %2979 = vmatprep.subr.bf16.mxu1 %v3614_v6 }
 0x583   :  { %v875_v28 = vmul.f32 %v3337_v26, %v3321_v51  ;;  %2962 = vmatmul.mubr.msk.bf16.vlgmr.msra.gmra.mrb[20].mxu0 %vm194_vm0, %v878_v24 }
 0x584   :  { %2975 = vmatprep.mubr.msk.bf16.mxu0 %vm3615_vm3, %v3614_v6  ;;  %2972 = vmatpush3.bf16.msra.mxu0 %v3284_v35 }
 0x585   :  { %v879_v30 = vpack.c.bf16 %v875_v28, %v874_v27  ;;  %2973 = vmatprep.subr.bf16.mxu0 %v3614_v6 }
 0x587   :  { %2968 = vmatmul.mubr.msk.bf16.vlgmr.msra.gmra.mrb[20].mxu1 %vm194_vm0, %v879_v30  ;;  %v3286_v30 = vld [vmem:[#allocation12] sm:$0xff]  }
 0x588   :  { %2983 = vmatprep.mubr.msk.bf16.mxu1 %vm3615_vm3, %v3614_v6  ;;  %2974 = vmatpush3.bf16.msra.mxu0 %v3285_v38 }
 0x589   :  { %2987 = vmatprep.subr.bf16.mxu0 %v3614_v6  ;;  %2980 = vmatpush3.bf16.msra.mxu1 %v3286_v30 }
 0x58a   :  { %2981 = vmatprep.subr.bf16.mxu1 %v3614_v6 }
 0x5ec   :  { %v917_v31 = vpop.f32.mrb[16].mxu0 }
 0x5ed   :  { %v2951_v32 = vpop.f32.mrb[17].mxu0 }
 0x5ee   :  { %v920_v33 = vpop.f32.mrb[18].mxu0  ;;  %v3289_v32 = vld [vmem:[%s4287_s12 + $0x8] sm:$0xff]  }
 0x5ef   :  { %v2952_v34 = vpop.f32.mrb[19].mxu0 }
 0x652   :  { %v961_v36 = vpop.f32.mrb[16].mxu1 }
 0x653   :  { %v2957_v37 = vpop.f32.mrb[17].mxu1 }
 0x654   :  { %v964_v39 = vpop.f32.mrb[18].mxu1 }
 0x655   :  { %v3203_v40 = vpack.i.bf16 %v964_v39, %v961_v36  ;;  %v2958_v41 = vpop.f32.mrb[19].mxu1 }
 0x656   :  { %v1005_v42 = vpop.f32.mrb[20].mxu0  ;;  %v2723_v41 = vld [vmem:[%s4284_s9] ss:$0 sm:$0xff] }
 0x657   :  { %v2963_v43 = vpop.f32.mrb[21].mxu0  ;;  %3204 = vrot.lane.b32.xlu1 %v3203_v40, %s3598_s23 }
 0x658   :  { %v1008_v44 = vpop.f32.mrb[22].mxu0 }
 0x659   :  { %v3208_v45 = vpack.i.bf16 %v1008_v44, %v1005_v42  ;;  %v2964_v46 = vpop.f32.mrb[23].mxu0 }
 0x65a   :  { %v1049_v47 = vpop.f32.mrb[20].mxu1 }
 0x65b   :  { %3209 = vrot.lane.b32.xlu0 %v3208_v45, %s3610_s7  ;;  %v2969_v48 = vpop.f32.mrb[21].mxu1  ;;  %v2724_v45 = vld [vmem:[%s4284_s9 + $0x1] ss:$0 sm:$0xff] }
 0x65c   :  { %v1052_v49 = vpop.f32.mrb[22].mxu1 }
 0x65d   :  { %v3213_v50 = vpack.i.bf16 %v1052_v49, %v1049_v47  ;;  %v2970_v51 = vpop.f32.mrb[23].mxu1 }
 0x65e   :  { %v3291_v51 = vld [vmem:[%s4287_s12 + $0x18] sm:$0xff]  }
 0x65f   :  { %3214 = vrot.lane.b32.xlu1 %v3213_v50, %s3620_s22  ;;  %v3290_v50 = vld [vmem:[%s4287_s12 + $0x10] sm:$0xff]  }
 0x6c9   :  { %v3205_v52 = vpop.permute.xlu1 %3204 }
 0x6ca   :  { %v3207_v55 = vunpack.i.h.bf16 %v3205_v52  ;;  %v3206_v56 = vunpack.i.l.bf16 %v3205_v52  ;;  %v2725_v52 = vld [vmem:[%s4286_s11] ss:$0 sm:$0xff] }
 0x6cc   :  { %v1081_v60 = vsel %vm583_vm5, %v920_v33, %v3207_v55  ;;  %v1080_v61 = vsel %vm583_vm5, %v917_v31, %v3206_v56  ;;  %v3288_v31 = vld [vmem:[%s4287_s12] sm:$0xff]  }
 0x6cd   :  { %v3210_v54 = vpop.permute.xlu0 %3209 }
 0x6ce   :  { %v3212_v57 = vunpack.i.h.bf16 %v3210_v54  ;;  %v3211_v58 = vunpack.i.l.bf16 %v3210_v54 }
 0x6d0   :  { %v1082_v53 = vsel %vm194_vm0, %v1080_v61, %v3211_v58  ;;  %v1083_v0 = vsel %vm194_vm0, %v1081_v60, %v3212_v57 }
 0x6d1   :  { %v3215_v59 = vpop.permute.xlu1 %3214 }
 0x6d2   :  { %v3217_v62 = vunpack.i.h.bf16 %v3215_v59  ;;  %v3216_v63 = vunpack.i.l.bf16 %v3215_v59 }
 0x6d4   :  { %v1086_v1 = vsel %vm1084_vm10, %v1083_v0, %v3217_v62  ;;  %v1085_v2 = vsel %vm1084_vm10, %v1082_v53, %v3216_v63  ;;  %v2729_v63 = vld [vmem:[#allocation14] ss:$0 sm:$0xff] }
 0x6d5   :  { %v1087_v3 = vpack.c.bf16 %v1086_v1, %v1085_v2 }
 0x6d7   :  { %2976 = vmatmul.mubr.msk.bf16.vlgmr.msra.gmra.mrb[24].mxu0 %vm334_vm4, %v1087_v3 }
 0x6d8   :  { %2995 = vmatprep.mubr.msk.bf16.mxu0 %vm3615_vm3, %v3614_v6  ;;  %2988 = vmatpush3.bf16.msra.mxu0 %v3288_v31 }
 0x6d9   :  { %2989 = vmatprep.subr.bf16.mxu0 %v3614_v6 }
 0x6dc   :  { %2990 = vmatpush3.bf16.msra.mxu0 %v3289_v32 }
 0x6dd   :  { %2991 = vmatprep.subr.bf16.mxu0 %v3614_v6 }
 0x6e0   :  { %2992 = vmatpush3.bf16.msra.mxu0 %v3290_v50 }
 0x6e1   :  { %2993 = vmatprep.subr.bf16.mxu0 %v3614_v6 }
 0x6e4   :  { %2994 = vmatpush3.bf16.msra.mxu0 %v3291_v51 }
 0x6e5   :  { %3015 = vmatprep.subr.bf16.mxu0 %v3614_v6 }
 0x7aa   :  { %v1148_v5 = vpop.f32.mrb[24].mxu0 }
 0x7ab   :  { %v1149_v7 = vadd.f32 %v2719_v4, %v1148_v5  ;;  %v2977_v8 = vpop.f32.mrb[25].mxu0 }
 0x7ac   :  { %v1151_v10 = vpop.f32.mrb[26].mxu0 }
 0x7ad   :  { %v1152_v11 = vadd.f32 %v2719_v4, %v1151_v10  ;;  %v2978_v12 = vpop.f32.mrb[27].mxu0  ;;  %v1155_v13 = vadd.f32 %v1149_v7, %v3878_v22 }
 0x7af   :  { %v1159_v14 = vsel %vm334_vm4, %v1155_v13, 0.0  ;;  %v1156_v15 = vadd.f32 %v1152_v11, %v3876_v20  ;;  %v3287_v20 = vld [vmem:[#allocation12 + $0x8] sm:$0xff]  }
 0x7b0   :  { %1160 = vadd.xlane.f32.xlu0 %v1159_v14  ;;  %2982 = vmatpush3.bf16.msra.mxu1 %v3287_v20 }
 0x7b1   :  { %v1162_v16 = vsel %vm334_vm4, %v1156_v15, 0.0  ;;  %2999 = vmatprep.subr.bf16.mxu1 %v3614_v6 }
 0x7b2   :  { %1163 = vadd.xlane.f32.xlu1 %v1162_v16 }
 0x83d   :  { %v1161_v17 = vpop.xlane.xlu0 %1160 }
 0x83e   :  { %v1166_v18 = vmul.f32 0.03125, %v1161_v17 }
 0x83f   :  { %v1164_v19 = vpop.xlane.xlu1 %1163 }
 0x840   :  { %v1168_v21 = vsub.f32 %v1155_v13, %v1166_v18  ;;  %v1167_v23 = vmul.f32 0.03125, %v1164_v19 }
 0x842   :  { %v1169_v24 = vsub.f32 %v1156_v15, %v1167_v23  ;;  %v1170_v26 = vmul.f32 %v1168_v21, %v1168_v21  ;;  %v3292_v23 = vld [vmem:[%s4280_s5 + $0x30] sm:$0xff]  }
 0x844   :  { %v1172_v27 = vsel %vm334_vm4, %v1170_v26, 0.0  ;;  %v1171_v28 = vmul.f32 %v1169_v24, %v1169_v24  ;;  %v3294_v26 = vld [vmem:[%s4280_s5 + $0x38] sm:$0xff]  }
 0x845   :  { %1173 = vadd.xlane.f32.xlu0 %v1172_v27  ;;  %v3295_v27 = vld [vmem:[%s4280_s5 + $0x58] sm:$0xff]  }
 0x846   :  { %v1175_v22 = vsel %vm334_vm4, %v1171_v28, 0.0 }
 0x849   :  { %1176 = vadd.xlane.f32.xlu0 %v1175_v22 }
 0x8d2   :  { %v1174_v33 = vpop.xlane.xlu0 %1173 }
 0x8d3   :  { %v1178_v34 = vmul.f32 0.03125, %v1174_v33 }
 0x8d5   :  { %v1180_v35 = vadd.f32 1e-05, %v1178_v34  ;;  %v2735_v34 = vld [vmem:[#allocation15] ss:$0 sm:$0xff] }
 0x8d6   :  { %v1177_v36 = vpop.xlane.xlu0 %1176 }
 0x8d7   :  { %3338 = vrsqrt.f32 %v1180_v35  ;;  %v1179_v37 = vmul.f32 0.03125, %v1177_v36 }
 0x8d9   :  { %v1181_v38 = vadd.f32 1e-05, %v1179_v37 }
 0x8db   :  { %3340 = vrsqrt.f32 %v1181_v38 }
 0x8e1   :  { %v3339_v39 = vpop.eup %3338 }
 0x8e2   :  { %v1184_v40 = vmul.f32 %v3339_v39, %v1168_v21  ;;  %v2736_v39 = vld [vmem:[#allocation15 + $0x1] ss:$0 sm:$0xff] }
 0x8e4   :  { %v1190_v43 = vmul.f32 %v2723_v41, %v1184_v40 }
 0x8e5   :  { %v3341_v42 = vpop.eup %3340 }
 0x8e6   :  { %v1185_v44 = vmul.f32 %v3341_v42, %v1169_v24  ;;  %v1196_v47 = vadd.f32 %v2724_v45, %v1190_v43  ;;  %v3293_v24 = vld [vmem:[%s4280_s5 + $0x50] sm:$0xff]   ;;  %v3296_v43 = vld [vmem:[%s4280_s5 + $0x40] sm:$0xff]  }
 0x8e8   :  { %v1191_v46 = vmul.f32 %v2723_v41, %v1185_v44 }
 0x8ea   :  { %v1197_v48 = vadd.f32 %v2724_v45, %v1191_v46  ;;  %v3297_v45 = vld [vmem:[%s4280_s5 + $0x48] sm:$0xff]   ;;  %v2742_v46 = vld [vmem:[%s4281_s6 + $0x3] ss:$0 sm:$0xff] }
 0x8ec   :  { %v1198_v49 = vpack.c.bf16 %v1197_v48, %v1196_v47 }
 0x8ee   :  { %2984 = vmatmul.mubr.msk.bf16.vlgmr.msra.gmra.mrb[24].mxu1 %vm334_vm4, %v1198_v49  ;;  %v2760_v49 = vld [vmem:[%s4281_s6 + $0x5] ss:$0 sm:$0xff] }
 0x8ef   :  { %3003 = vmatprep.mubr.msk.bf16.mxu1 %vm3615_vm3, %v3614_v6  ;;  %3000 = vmatpush3.bf16.msra.mxu1 %v3292_v23 }
 0x8f0   :  { %3001 = vmatprep.subr.bf16.mxu1 %v3614_v6 }
 0x8f3   :  { %3002 = vmatpush3.bf16.msra.mxu1 %v3294_v26 }
 0x8f4   :  { %3007 = vmatprep.subr.bf16.mxu1 %v3614_v6 }
 0x9c1   :  { %v1259_v54 = vpop.f32.mrb[24].mxu1 }
 0x9c2   :  { %v1260_v55 = vadd.f32 %v2725_v52, %v1259_v54  ;;  %v2985_v56 = vpop.f32.mrb[25].mxu1 }
 0x9c3   :  { %v1262_v57 = vpop.f32.mrb[26].mxu1 }
 0x9c4   :  { %v1263_v58 = vadd.f32 %v2725_v52, %v1262_v57  ;;  %v2986_v59 = vpop.f32.mrb[27].mxu1  ;;  %v1266_v60 = vmax.f32 %v1260_v55, 0.0 }
 0x9c6   :  { %v1267_v61 = vmax.f32 %v1263_v58, 0.0 }
 0x9c8   :  { %v1268_v62 = vpack.c.bf16 %v1267_v61, %v1266_v60 }
 0x9ca   :  { %2996 = vmatmul.mubr.msk.bf16.vlgmr.msra.gmra.mrb[28].mxu0 %vm1308_vm11, %v1268_v62 }
 0x9cb   :  { %3019 = vmatprep.mubr.msk.bf16.mxu0 %vm3615_vm3, %v3614_v6  ;;  %3016 = vmatpush3.bf16.msra.mxu0 %v3293_v24 }
 0x9cc   :  { %3017 = vmatprep.subr.bf16.mxu0 %v3614_v6 }
 0x9cf   :  { %3018 = vmatpush3.bf16.msra.mxu0 %v3295_v27 }
 0x9d0   :  { %3029 = vmatprep.subr.bf16.mxu0 %v3614_v6 }
 0xa9d   :  { %v1346_v53 = vpop.f32.mrb[28].mxu0 }
 0xa9e   :  { %v1347_v0 = vadd.f32 %v2729_v63, %v1346_v53  ;;  %v2997_v1 = vpop.f32.mrb[29].mxu0 }
 0xa9f   :  { %v1349_v2 = vpop.f32.mrb[30].mxu0 }
 0xaa0   :  { %v1350_v3 = vadd.f32 %v2729_v63, %v1349_v2  ;;  %v2998_v4 = vpop.f32.mrb[31].mxu0  ;;  %v1353_v5 = vadd.f32 %v1347_v0, %v1196_v47  ;;  %v2751_v0 = vld [vmem:[%s4281_s6 + $0x4] ss:$0 sm:$0xff] }
 0xaa2   :  { %v1357_v7 = vsel %vm334_vm4, %v1353_v5, 0.0  ;;  %v1354_v8 = vadd.f32 %v1350_v3, %v1197_v48 }
 0xaa3   :  { %1358 = vadd.xlane.f32.xlu1 %v1357_v7 }
 0xaa4   :  { %v1360_v10 = vsel %vm334_vm4, %v1354_v8, 0.0 }
 0xaa5   :  { %1361 = vadd.xlane.f32.xlu0 %v1360_v10 }
 0xb30   :  { %v1359_v11 = vpop.xlane.xlu1 %1358 }
 0xb31   :  { %v1363_v12 = vmul.f32 0.03125, %v1359_v11 }
 0xb32   :  { %v1362_v13 = vpop.xlane.xlu0 %1361 }
 0xb33   :  { %v1365_v14 = vsub.f32 %v1353_v5, %v1363_v12  ;;  %v1364_v15 = vmul.f32 0.03125, %v1362_v13 }
 0xb35   :  { %v1366_v16 = vsub.f32 %v1354_v8, %v1364_v15  ;;  %v1367_v17 = vmul.f32 %v1365_v14, %v1365_v14 }
 0xb37   :  { %v1369_v18 = vsel %vm334_vm4, %v1367_v17, 0.0  ;;  %v1368_v19 = vmul.f32 %v1366_v16, %v1366_v16 }
 0xb38   :  { %1370 = vadd.xlane.f32.xlu1 %v1369_v18 }
 0xb39   :  { %v1372_v21 = vsel %vm334_vm4, %v1368_v19, 0.0 }
 0xb3a   :  { %1373 = vadd.xlane.f32.xlu0 %v1372_v21 }
 0xbc5   :  { %v1371_v28 = vpop.xlane.xlu1 %1370 }
 0xbc6   :  { %v1375_v22 = vmul.f32 0.03125, %v1371_v28 }
 0xbc7   :  { %v1374_v30 = vpop.xlane.xlu0 %1373 }
 0xbc8   :  { %v1377_v20 = vadd.f32 1e-05, %v1375_v22  ;;  %v1376_v31 = vmul.f32 0.03125, %v1374_v30 }
 0xbca   :  { %3342 = vrsqrt.f32 %v1377_v20  ;;  %v1378_v32 = vadd.f32 1e-05, %v1376_v31 }
 0xbcc   :  { %3344 = vrsqrt.f32 %v1378_v32 }
 0xbd4   :  { %v3343_v33 = vpop.eup %3342 }
 0xbd5   :  { %v1381_v35 = vmul.f32 %v3343_v33, %v1365_v14 }
 0xbd6   :  { %v3345_v36 = vpop.eup %3344 }
 0xbd7   :  { %v1387_v37 = vmul.f32 %v2735_v34, %v1381_v35  ;;  %v1382_v38 = vmul.f32 %v3345_v36, %v1366_v16 }
 0xbd9   :  { %v1388_v40 = vmul.f32 %v2735_v34, %v1382_v38  ;;  %v4069_v41 = vadd.f32 %v2736_v39, %v1387_v37 }
 0xbdb   :  { %v4071_v42 = vadd.f32 %v2736_v39, %v1388_v40 }
 0xbdd   :  { %v1395_v44 = vpack.c.bf16 %v4071_v42, %v4069_v41 }
 0xbdf   :  { %3004 = vmatmul.mubr.msk.bf16.vlgmr.msra.gmra.mrb[28].mxu1 %vm334_vm4, %v1395_v44  ;;  %3020 = vmatmul.mubr.msk.bf16.vlgmr.msra.gmra.mrb[32].mxu0 %vm334_vm4, %v1395_v44 }
 0xbe0   :  { %3008 = vmatpush3.bf16.msra.mxu1 %v3296_v43  ;;  %3011 = vmatprep.mubr.msk.bf16.mxu1 %vm3615_vm3, %v3614_v6 }
 0xbe1   :  { %3009 = vmatprep.subr.bf16.mxu1 %v3614_v6  ;;  %3031 = vmatprep.mubr.msk.bf16.mxu0 %vm3615_vm3, %v3614_v6 }
 0xbe4   :  { %3010 = vmatpush3.bf16.msra.mxu1 %v3297_v45 }
 0xbe5   :  { %3023 = vmatprep.subr.bf16.mxu1 %v3614_v6 }
 0xbe7   :  { %3012 = vmatmul.mubr.msk.bf16.vlgmr.msra.gmra.mrb[32].mxu1 %vm334_vm4, %v1395_v44 }
 0xbe8   :  { %3025 = vmatprep.mubr.msk.bf16.mxu1 %vm3615_vm3, %v3614_v6 }
 0xcb2   :  { %v1458_v47 = vpop.f32.mrb[28].mxu1  ;;  %v1590_v48 = vpop.f32.mrb[32].mxu0 }
 0xcb3   :  { %v3005_v50 = vpop.f32.mrb[29].mxu1  ;;  %v3021_v51 = vpop.f32.mrb[33].mxu0  ;;  %v1459_v55 = vadd.f32 %v2742_v46, %v1458_v47  ;;  %v1591_v60 = vadd.f32 %v2760_v49, %v1590_v48 }
 0xcb4   :  { %v1461_v52 = vpop.f32.mrb[30].mxu1  ;;  %v1593_v54 = vpop.f32.mrb[34].mxu0 }
 0xcb5   :  { %v1462_v56 = vadd.f32 %v2742_v46, %v1461_v52  ;;  %v1594_v57 = vadd.f32 %v2760_v49, %v1593_v54  ;;  %v3006_v58 = vpop.f32.mrb[31].mxu1  ;;  %v3022_v59 = vpop.f32.mrb[35].mxu0 }
 0xcb7   :  { %v1617_v61 = vpack.c.bf16 %v1462_v56, %v1459_v55  ;;  %v3238_v62 = vpack.i.bf16 %v1462_v56, %v1459_v55  ;;  %v1665_v63 = vpack.c.bf16 %v1594_v57, %v1591_v60  ;;  %v4098_v53 = vpack.i.bf16 %v1594_v57, %v1591_v60 }
 0xcba   :  { %v1524_v1 = vpop.f32.mrb[32].mxu1 }
 0xcbb   :  { %v3013_v2 = vpop.f32.mrb[33].mxu1  ;;  %v1525_v4 = vadd.f32 %v2751_v0, %v1524_v1 }
 0xcbc   :  { %v1527_v3 = vpop.f32.mrb[34].mxu1 }
 0xcbd   :  { %v1528_v5 = vadd.f32 %v2751_v0, %v1527_v3  ;;  %v3014_v7 = vpop.f32.mrb[35].mxu1 }
 0xcbf   :  { %v3223_v8 = vpack.i.bf16 %v1528_v5, %v1525_v4  ;;  %v1641_v10 = vpack.c.bf16 %v1528_v5, %v1525_v4 }
 0xcc1   :  { %3224 = vrot.lane.b32.xlu0 %v3223_v8, %s3617_s16  ;;  %3219 = vrot.lane.b32.xlu1 %v3223_v8, %s3616_s19  ;;  %v1673_v11 = vsel %vm583_vm5, %v1641_v10, 0 }
 0xcc2   :  { %3024 = vmatpush3.bf16.xpose.msra.mxu1 %v1673_v11 }
 0xcc3   :  { %3035 = vmatprep.subr.bf16.mxu1 %v3614_v6 }
 0xcc5   :  { %3239 = vrot.lane.b32.xlu0 %v3238_v62, %s3617_s16  ;;  %3229 = vrot.lane.b32.xlu1 %v3238_v62, %s3616_s19 }
 0xcc9   :  { %3234 = vrot.lane.b32.xlu1 %v3223_v8, %s3618_s28  ;;  %3026 = vmatmul.mubr.msk.bf16.vlgmr.msra.gmra.mrb[36].mxu1 %vm583_vm5, %v1617_v61 }
 0xcca   :  { %3037 = vmatprep.mubr.msk.bf16.mxu1 %vm3615_vm3, %v3614_v6 }
 0xccd   :  { %3244 = vrot.lane.b32.xlu1 %v3238_v62, %s3618_s28 }
 0xd33   :  { %v3225_v12 = vpop.permute.xlu0 %3224  ;;  %v3220_v13 = vpop.permute.xlu1 %3219 }
 0xd34   :  { %v3227_v14 = vunpack.i.h.bf16 %v3225_v12  ;;  %v3226_v15 = vunpack.i.l.bf16 %v3225_v12  ;;  %v3222_v16 = vunpack.i.h.bf16 %v3220_v13  ;;  %v3221_v17 = vunpack.i.l.bf16 %v3220_v13 }
 0xd36   :  { %v1643_v18 = vpack.c.bf16 %v3227_v14, %v3226_v15  ;;  %v1642_v19 = vpack.c.bf16 %v3222_v16, %v3221_v17 }
 0xd37   :  { %v3230_v21 = vpop.permute.xlu1 %3229  ;;  %v3240_v23 = vpop.permute.xlu0 %3239 }
 0xd38   :  { %v1720_v24 = vsel %vm583_vm5, %v1642_v19, 0  ;;  %v1767_v26 = vsel %vm583_vm5, %v1643_v18, 0  ;;  %v3242_v27 = vunpack.i.h.bf16 %v3240_v23  ;;  %v3241_v28 = vunpack.i.l.bf16 %v3240_v23 }
 0xd39   :  { %3030 = vmatpush3.bf16.xpose.msra.mxu0 %v1720_v24  ;;  %3036 = vmatpush3.bf16.xpose.msra.mxu1 %v1767_v26  ;;  %v3232_v22 = vunpack.i.h.bf16 %v3230_v21  ;;  %v3231_v30 = vunpack.i.l.bf16 %v3230_v21 }
 0xd3a   :  { %3041 = vmatprep.subr.bf16.mxu0 %v3614_v6  ;;  %3047 = vmatprep.subr.bf16.mxu1 %v3614_v6  ;;  %v1619_v34 = vpack.c.bf16 %v3242_v27, %v3241_v28 }
 0xd3b   :  { %v3235_v20 = vpop.permute.xlu1 %3234  ;;  %v1618_v35 = vpack.c.bf16 %v3232_v22, %v3231_v30 }
 0xd3c   :  { %v3237_v31 = vunpack.i.h.bf16 %v3235_v20  ;;  %v3236_v32 = vunpack.i.l.bf16 %v3235_v20 }
 0xd3e   :  { %v1644_v33 = vpack.c.bf16 %v3237_v31, %v3236_v32 }
 0xd3f   :  { %v3245_v36 = vpop.permute.xlu1 %3244 }
 0xd40   :  { %v1814_v37 = vsel %vm583_vm5, %v1644_v33, 0  ;;  %3032 = vmatmul.mubr.msk.bf16.vlgmr.msra.gmra.mrb[36].mxu0 %vm583_vm5, %v1618_v35  ;;  %3038 = vmatmul.mubr.msk.bf16.vlgmr.msra.gmra.mrb[40].mxu1 %vm583_vm5, %v1619_v34  ;;  %v3247_v38 = vunpack.i.h.bf16 %v3245_v36  ;;  %v3246_v39 = vunpack.i.l.bf16 %v3245_v36 }
 0xd41   :  { %3042 = vmatpush3.bf16.xpose.msra.mxu0 %v1814_v37  ;;  %3048 = vmatpush3.bf16.msra.mxu1 %v1665_v63 }
 0xd42   :  { %3043 = vmatprep.mubr.msk.bf16.mxu0 %vm3615_vm3, %v3614_v6  ;;  %3053 = vmatprep.subr.bf16.mxu0 %v3614_v6  ;;  %v1620_v40 = vpack.c.bf16 %v3247_v38, %v3246_v39 }
 0xd43   :  { %3049 = vmatprep.mubr.msk.bf16.mxu1 %vm3615_vm3, %v3614_v6  ;;  %3059 = vmatprep.subr.bf16.mxu1 %v3614_v6 }
 0xd48   :  { %3044 = vmatmul.mubr.msk.bf16.vlgmr.msra.gmra.mrb[40].mxu0 %vm583_vm5, %v1620_v40 }
 0xd49   :  { %3055 = vmatprep.mubr.msk.bf16.mxu0 %vm3615_vm3, %v3614_v6 }
 0xd9c   :  { %v1709_v43 = vpop.f32.mrb[36].mxu1 }
 0xd9d   :  { %v1857_v44 = vmul.f32 0.35355338, %v1709_v43  ;;  %v3027_v45 = vpop.f32.mrb[37].mxu1 }
 0xd9e   :  { %v1712_v46 = vpop.f32.mrb[38].mxu1 }
 0xd9f   :  { %v1858_v47 = vmul.f32 0.35355338, %v1712_v46  ;;  %v3028_v48 = vpop.f32.mrb[39].mxu1  ;;  %v1865_v49 = vadd.f32 %v1857_v44, %v3940_v25 }
 0xda1   :  { %v1873_v50 = vsel %vm194_vm0, %v1865_v49, -inf  ;;  %v1866_v51 = vadd.f32 %v1858_v47, %v3942_v29 }
 0xda2   :  { %1874 = vmax.xlane.f32.xlu0 %v1873_v50 }
 0xda3   :  { %v1876_v52 = vsel %vm194_vm0, %v1866_v51, -inf }
 0xda4   :  { %1877 = vmax.xlane.f32.xlu1 %v1876_v52 }
 0xe13   :  { %v1756_v54 = vpop.f32.mrb[36].mxu0  ;;  %v1803_v55 = vpop.f32.mrb[40].mxu1 }
 0xe14   :  { %v1859_v56 = vmul.f32 0.35355338, %v1756_v54  ;;  %v1861_v57 = vmul.f32 0.35355338, %v1803_v55  ;;  %v3033_v58 = vpop.f32.mrb[37].mxu0  ;;  %v3039_v59 = vpop.f32.mrb[41].mxu1 }
 0xe15   :  { %v1759_v60 = vpop.f32.mrb[38].mxu0  ;;  %v1806_v61 = vpop.f32.mrb[42].mxu1 }
 0xe16   :  { %v1860_v62 = vmul.f32 0.35355338, %v1759_v60  ;;  %v3034_v63 = vpop.f32.mrb[39].mxu0  ;;  %v3040_v0 = vpop.f32.mrb[43].mxu1  ;;  %v1867_v1 = vadd.f32 %v1859_v56, %v3940_v25  ;;  %v1869_v2 = vadd.f32 %v1861_v57, %v3940_v25  ;;  %v1862_v3 = vmul.f32 0.35355338, %v1806_v61 }
 0xe18   :  { %v1879_v4 = vsel %vm194_vm0, %v1867_v1, -inf  ;;  %v1885_v5 = vsel %vm194_vm0, %v1869_v2, -inf  ;;  %v1868_v7 = vadd.f32 %v1860_v62, %v3942_v29  ;;  %v1870_v13 = vadd.f32 %v1862_v3, %v3942_v29 }
 0xe19   :  { %1880 = vmax.xlane.f32.xlu0 %v1879_v4  ;;  %1886 = vmax.xlane.f32.xlu1 %v1885_v5 }
 0xe1a   :  { %v1882_v12 = vsel %vm194_vm0, %v1868_v7, -inf  ;;  %v1888_v19 = vsel %vm194_vm0, %v1870_v13, -inf }
 0xe1b   :  { %v1850_v8 = vpop.f32.mrb[40].mxu0 }
 0xe1c   :  { %v1863_v10 = vmul.f32 0.35355338, %v1850_v8  ;;  %v3045_v11 = vpop.f32.mrb[41].mxu0 }
 0xe1d   :  { %v1853_v14 = vpop.f32.mrb[42].mxu0  ;;  %1883 = vmax.xlane.f32.xlu0 %v1882_v12 }
 0xe1e   :  { %v1864_v15 = vmul.f32 0.35355338, %v1853_v14  ;;  %v3046_v16 = vpop.f32.mrb[43].mxu0  ;;  %v1871_v17 = vadd.f32 %v1863_v10, %v3940_v25 }
 0xe20   :  { %v1891_v18 = vsel %vm194_vm0, %v1871_v17, -inf  ;;  %v1872_v21 = vadd.f32 %v1864_v15, %v3942_v29 }
 0xe21   :  { %1892 = vmax.xlane.f32.xlu1 %v1891_v18  ;;  %1889 = vmax.xlane.f32.xlu0 %v1888_v19 }
 0xe22   :  { %v1894_v23 = vsel %vm194_vm0, %v1872_v21, -inf }
 0xe25   :  { %1895 = vmax.xlane.f32.xlu0 %v1894_v23 }
 0xe2f   :  { %v1875_v28 = vpop.xlane.xlu0 %1874 }
 0xe30   :  { %v1897_v22 = vsub.f32 %v1865_v49, %v1875_v28 }
 0xe31   :  { %v1878_v24 = vpop.xlane.xlu1 %1877 }
 0xe32   :  { %v1898_v26 = vsub.f32 %v1866_v51, %v1878_v24  ;;  %3249 = vrot.lane.b32.xlu1 %v4098_v53, %s3616_s19  ;;  %v1905_v29 = vmul.f32 1.442695, %v1897_v22 }
 0xe34   :  { %v1907_v27 = vmul.f32 1.442695, %v1898_v26 }
 0xe36   :  { %3346 = vpow2.f32 %v1907_v27 }
 0xe37   :  { %3348 = vpow2.f32 %v1905_v29 }
 0xe40   :  { %v4148_v25 = vpop.eup %3346 }
 0xe41   :  { %v1924_v30 = vsel %vm194_vm0, %v4148_v25, 0.0  ;;  %v3349_v20 = vpop.eup %3348 }
 0xe42   :  { %1925 = vadd.xlane.f32.xlu0 %v1924_v30  ;;  %v1921_v31 = vsel %vm194_vm0, %v3349_v20, 0.0 }
 0xe56   :  { %1922 = vadd.xlane.f32.xlu1 %v1921_v31 }
 0xea6   :  { %v1881_v32 = vpop.xlane.xlu0 %1880  ;;  %v1887_v33 = vpop.xlane.xlu1 %1886 }
 0xea7   :  { %v1899_v34 = vsub.f32 %v1867_v1, %v1881_v32  ;;  %v1901_v35 = vsub.f32 %v1869_v2, %v1887_v33 }
 0xea9   :  { %v1909_v36 = vmul.f32 1.442695, %v1899_v34  ;;  %v1913_v37 = vmul.f32 1.442695, %v1901_v35 }
 0xeaa   :  { %v1884_v38 = vpop.xlane.xlu0 %1883 }
 0xeab   :  { %3350 = vpow2.f32 %v1909_v36  ;;  %v1900_v39 = vsub.f32 %v1868_v7, %v1884_v38 }
 0xeac   :  { %3352 = vpow2.f32 %v1913_v37 }
 0xead   :  { %v1911_v40 = vmul.f32 1.442695, %v1900_v39 }
 0xeae   :  { %v1893_v43 = vpop.xlane.xlu1 %1892  ;;  %v1890_v44 = vpop.xlane.xlu0 %1889 }
 0xeaf   :  { %3354 = vpow2.f32 %v1911_v40  ;;  %v1903_v45 = vsub.f32 %v1871_v17, %v1893_v43  ;;  %v1902_v46 = vsub.f32 %v1870_v13, %v1890_v44 }
 0xeb1   :  { %v1917_v47 = vmul.f32 1.442695, %v1903_v45  ;;  %v1915_v48 = vmul.f32 1.442695, %v1902_v46 }
 0xeb2   :  { %v3250_v49 = vpop.permute.xlu1 %3249  ;;  %v1896_v50 = vpop.xlane.xlu0 %1895 }
 0xeb3   :  { %3356 = vpow2.f32 %v1917_v47  ;;  %v3252_v51 = vunpack.i.h.bf16 %v3250_v49  ;;  %v3251_v52 = vunpack.i.l.bf16 %v3250_v49  ;;  %v1904_v54 = vsub.f32 %v1872_v21, %v1896_v50 }
 0xeb4   :  { %3358 = vpow2.f32 %v1915_v48  ;;  %v3298_v48 = vld [vmem:[#allocation11 + $0x10] sm:$0xff]  }
 0xeb5   :  { %v3351_v55 = vpop.eup %3350  ;;  %v1666_v56 = vpack.c.bf16 %v3252_v51, %v3251_v52  ;;  %v1919_v57 = vmul.f32 1.442695, %v1904_v54  ;;  %v3299_v51 = vld [vmem:[#allocation11 + $0x18] sm:$0xff]  }
 0xeb6   :  { %v1927_v58 = vsel %vm194_vm0, %v3351_v55, 0.0  ;;  %v3353_v59 = vpop.eup %3352 }
 0xeb7   :  { %3360 = vpow2.f32 %v1919_v57  ;;  %1928 = vadd.xlane.f32.xlu1 %v1927_v58  ;;  %3054 = vmatpush3.bf16.msra.mxu0 %v1666_v56  ;;  %v1933_v61 = vsel %vm194_vm0, %v3353_v59, 0.0 }
 0xeb8   :  { %3065 = vmatprep.subr.bf16.mxu0 %v3614_v6 }
 0xeb9   :  { %v3355_v60 = vpop.eup %3354 }
 0xeba   :  { %v1930_v62 = vsel %vm194_vm0, %v3355_v60, 0.0 }
 0xebb   :  { %1934 = vadd.xlane.f32.xlu1 %v1933_v61  ;;  %1931 = vadd.xlane.f32.xlu0 %v1930_v62 }
 0xebd   :  { %v3357_v63 = vpop.eup %3356 }
 0xebe   :  { %v3359_v0 = vpop.eup %3358  ;;  %v1939_v1 = vsel %vm194_vm0, %v3357_v63, 0.0 }
 0xebf   :  { %1940 = vadd.xlane.f32.xlu1 %v1939_v1  ;;  %v1936_v2 = vsel %vm194_vm0, %v3359_v0, 0.0 }
 0xec0   :  { %1937 = vadd.xlane.f32.xlu0 %v1936_v2 }
 0xec1   :  { %v3361_v3 = vpop.eup %3360 }
 0xec2   :  { %v1942_v4 = vsel %vm194_vm0, %v3361_v3, 0.0 }
 0xec4   :  { %1943 = vadd.xlane.f32.xlu0 %v1942_v4 }
 0xecf   :  { %v1926_v5 = vpop.xlane.xlu0 %1925 }
 0xed0   :  { %3259 = vrot.lane.b32.xlu1 %v4098_v53, %s3618_s28  ;;  %3362 = vrcp.f32 %v1926_v5 }
 0xeda   :  { %3254 = vrot.lane.b32.xlu0 %v4098_v53, %s3617_s16  ;;  %v3363_v8 = vpop.eup %3362 }
 0xedb   :  { %v1954_v11 = vmul.f32 %v3363_v8, %v4148_v25 }
 0xee3   :  { %v1923_v7 = vpop.xlane.xlu1 %1922 }
 0xee4   :  { %3364 = vrcp.f32 %v1923_v7 }
 0xeee   :  { %v3365_v10 = vpop.eup %3364 }
 0xeef   :  { %v1953_v12 = vmul.f32 %v3365_v10, %v3349_v20 }
 0xef1   :  { %v1961_v13 = vpack.c.bf16 %v1954_v11, %v1953_v12 }
 0xef3   :  { %3050 = vmatmul.mubr.msk.bf16.vlgmr.msra.gmra.mrb[44].mxu1 %vm194_vm0, %v1961_v13 }
 0xef4   :  { %3061 = vmatprep.mubr.msk.bf16.mxu1 %vm3615_vm3, %v3614_v6 }
 0xf44   :  { %v1929_v14 = vpop.xlane.xlu1 %1928 }
 0xf45   :  { %3366 = vrcp.f32 %v1929_v14 }
 0xf48   :  { %v1935_v15 = vpop.xlane.xlu1 %1934  ;;  %v1932_v16 = vpop.xlane.xlu0 %1931 }
 0xf49   :  { %3368 = vrcp.f32 %v1932_v16 }
 0xf4a   :  { %3370 = vrcp.f32 %v1935_v15 }
 0xf4c   :  { %v1941_v53 = vpop.xlane.xlu1 %1940 }
 0xf4d   :  { %v1938_v17 = vpop.xlane.xlu0 %1937 }
 0xf4e   :  { %3372 = vrcp.f32 %v1938_v17 }
 0xf4f   :  { %3374 = vrcp.f32 %v1941_v53  ;;  %v3367_v21 = vpop.eup %3366 }
 0xf50   :  { %v3260_v18 = vpop.permute.xlu1 %3259  ;;  %v1955_v27 = vmul.f32 %v3367_v21, %v3351_v55 }
 0xf51   :  { %v1944_v19 = vpop.xlane.xlu0 %1943  ;;  %v3262_v24 = vunpack.i.h.bf16 %v3260_v18  ;;  %v3261_v26 = vunpack.i.l.bf16 %v3260_v18 }
 0xf52   :  { %3376 = vrcp.f32 %v1944_v19  ;;  %v2773_v19 = vld [vmem:[%s4283_s8 + $0x1] ss:$0 sm:$0xff] }
 0xf53   :  { %v3369_v23 = vpop.eup %3368  ;;  %v1668_v32 = vpack.c.bf16 %v3262_v24, %v3261_v26 }
 0xf54   :  { %v1956_v28 = vmul.f32 %v3369_v23, %v3355_v60  ;;  %v3371_v22 = vpop.eup %3370 }
 0xf55   :  { %v3255_v25 = vpop.permute.xlu0 %3254  ;;  %v1957_v34 = vmul.f32 %v3371_v22, %v3353_v59 }
 0xf56   :  { %v3257_v30 = vunpack.i.h.bf16 %v3255_v25  ;;  %v3256_v29 = vunpack.i.l.bf16 %v3255_v25  ;;  %v1962_v20 = vpack.c.bf16 %v1956_v28, %v1955_v27 }
 0xf58   :  { %v3373_v31 = vpop.eup %3372  ;;  %v1667_v33 = vpack.c.bf16 %v3257_v30, %v3256_v29  ;;  %3056 = vmatmul.mubr.msk.bf16.vlgmr.msra.gmra.mrb[44].mxu0 %vm194_vm0, %v1962_v20 }
 0xf59   :  { %v1958_v35 = vmul.f32 %v3373_v31, %v3359_v0  ;;  %v3375_v36 = vpop.eup %3374  ;;  %3066 = vmatpush3.bf16.msra.mxu0 %v1668_v32  ;;  %3067 = vmatprep.mubr.msk.bf16.mxu0 %vm3615_vm3, %v3614_v6 }
 0xf5a   :  { %3060 = vmatpush3.bf16.msra.mxu1 %v1667_v33  ;;  %3079 = vmatprep.subr.bf16.mxu0 %v3614_v6  ;;  %v1959_v39 = vmul.f32 %v3375_v36, %v3357_v63 }
 0xf5b   :  { %v1963_v37 = vpack.c.bf16 %v1958_v35, %v1957_v34  ;;  %3071 = vmatprep.subr.bf16.mxu1 %v3614_v6 }
 0xf5c   :  { %v3377_v38 = vpop.eup %3376 }
 0xf5d   :  { %v1960_v40 = vmul.f32 %v3377_v38, %v3361_v3  ;;  %3062 = vmatmul.mubr.msk.bf16.vlgmr.msra.gmra.mrb[48].mxu1 %vm194_vm0, %v1963_v37 }
 0xf5e   :  { %3075 = vmatprep.mubr.msk.bf16.mxu1 %vm3615_vm3, %v3614_v6  ;;  %3072 = vmatpush3.bf16.msra.mxu1 %v3298_v48 }
 0xf5f   :  { %v1964_v43 = vpack.c.bf16 %v1960_v40, %v1959_v39  ;;  %3073 = vmatprep.subr.bf16.mxu1 %v3614_v6  ;;  %v3300_v39 = vld [vmem:[#allocation12 + $0x10] sm:$0xff]   ;;  %v3302_v40 = vld [vmem:[%s4287_s12 + $0x20] sm:$0xff]  }
 0xf61   :  { %3068 = vmatmul.mubr.msk.bf16.vlgmr.msra.gmra.mrb[48].mxu0 %vm194_vm0, %v1964_v43  ;;  %v3303_v43 = vld [vmem:[%s4287_s12 + $0x28] sm:$0xff]  }
 0xf62   :  { %3083 = vmatprep.mubr.msk.bf16.mxu0 %vm3615_vm3, %v3614_v6  ;;  %3074 = vmatpush3.bf16.msra.mxu1 %v3299_v51 }
 0xf63   :  { %3087 = vmatprep.subr.bf16.mxu1 %v3614_v6  ;;  %3080 = vmatpush3.bf16.msra.mxu0 %v3300_v39  ;;  %v2800_v39 = vld [vmem:[#allocation15 + $0x2] ss:$0 sm:$0xff] }
 0xf64   :  { %3081 = vmatprep.subr.bf16.mxu0 %v3614_v6 }
 0xfc6   :  { %v2002_v44 = vpop.f32.mrb[44].mxu1 }
 0xfc7   :  { %v3051_v45 = vpop.f32.mrb[45].mxu1 }
 0xfc8   :  { %v2005_v46 = vpop.f32.mrb[46].mxu1 }
 0xfc9   :  { %v3052_v47 = vpop.f32.mrb[47].mxu1 }
0x102b   :  { %v2046_v49 = vpop.f32.mrb[44].mxu0 }
0x102c   :  { %v3057_v50 = vpop.f32.mrb[45].mxu0 }
0x102d   :  { %v2049_v52 = vpop.f32.mrb[46].mxu0 }
0x102e   :  { %v3263_v54 = vpack.i.bf16 %v2049_v52, %v2046_v49  ;;  %v3058_v55 = vpop.f32.mrb[47].mxu0  ;;  %v2779_v52 = vld [vmem:[%s4284_s9 + $0x2] ss:$0 sm:$0xff] }
0x1030   :  { %v2090_v56 = vpop.f32.mrb[48].mxu1  ;;  %3264 = vrot.lane.b32.xlu1 %v3263_v54, %s3598_s23 }
0x1031   :  { %v3063_v57 = vpop.f32.mrb[49].mxu1 }
0x1032   :  { %v2093_v58 = vpop.f32.mrb[50].mxu1  ;;  %v2780_v57 = vld [vmem:[%s4284_s9 + $0x3] ss:$0 sm:$0xff] }
0x1033   :  { %v3268_v59 = vpack.i.bf16 %v2093_v58, %v2090_v56  ;;  %v3064_v60 = vpop.f32.mrb[51].mxu1 }
0x1034   :  { %v2134_v61 = vpop.f32.mrb[48].mxu0 }
0x1035   :  { %v3069_v62 = vpop.f32.mrb[49].mxu0  ;;  %3269 = vrot.lane.b32.xlu0 %v3268_v59, %s3610_s7 }
0x1036   :  { %v2137_v63 = vpop.f32.mrb[50].mxu0  ;;  %v3304_v62 = vld [vmem:[%s4287_s12 + $0x30] sm:$0xff]  }
0x1037   :  { %v3273_v0 = vpack.i.bf16 %v2137_v63, %v2134_v61  ;;  %v3070_v1 = vpop.f32.mrb[51].mxu0  ;;  %v3305_v63 = vld [vmem:[%s4287_s12 + $0x38] sm:$0xff]   ;;  %s2489_s12 = sld [smem:[#allocation6]] }
0x1039   :  { %3274 = vrot.lane.b32.xlu1 %v3273_v0, %s3620_s22  ;;  %v2782_v0 = vld [vmem:[%s4286_s11 + $0x1] ss:$0 sm:$0xff]  ;;  %s2803_s11 = sld [smem:[#allocation6 + $0x1]] }
0x103f   :  { %s2495_s25 = sadd.s32 8, %s2803_s11 }
0x10a2   :  { %v3265_v2 = vpop.permute.xlu1 %3264 }
0x10a3   :  { %v3267_v4 = vunpack.i.h.bf16 %v3265_v2  ;;  %v3266_v5 = vunpack.i.l.bf16 %v3265_v2 }
0x10a5   :  { %v2165_v11 = vsel %vm583_vm5, %v2002_v44, %v3266_v5  ;;  %v2166_v12 = vsel %vm583_vm5, %v2005_v46, %v3267_v4 }
0x10a7   :  { %v3270_v3 = vpop.permute.xlu0 %3269 }
0x10a8   :  { %v3272_v7 = vunpack.i.h.bf16 %v3270_v3  ;;  %v3271_v8 = vunpack.i.l.bf16 %v3270_v3 }
0x10aa   :  { %v2168_v15 = vsel %vm194_vm0, %v2166_v12, %v3272_v7  ;;  %v2167_v16 = vsel %vm194_vm0, %v2165_v11, %v3271_v8  ;;  %v2794_v12 = vld [vmem:[#allocation14 + $0x1] ss:$0 sm:$0xff] }
0x10ab   :  { %v3275_v10 = vpop.permute.xlu1 %3274 }
0x10ac   :  { %v3277_v13 = vunpack.i.h.bf16 %v3275_v10  ;;  %v3276_v14 = vunpack.i.l.bf16 %v3275_v10 }
0x10ae   :  { %v2169_v53 = vsel %vm1084_vm10, %v2167_v16, %v3276_v14  ;;  %v2170_v17 = vsel %vm1084_vm10, %v2168_v15, %v3277_v13 }
0x10af   :  { %v2171_v18 = vpack.c.bf16 %v2170_v17, %v2169_v53 }
0x10b1   :  { %3076 = vmatmul.mubr.msk.bf16.vlgmr.msra.gmra.mrb[52].mxu1 %vm334_vm4, %v2171_v18 }
0x10b2   :  { %3095 = vmatprep.mubr.msk.bf16.mxu1 %vm3615_vm3, %v3614_v6  ;;  %3088 = vmatpush3.bf16.msra.mxu1 %v3302_v40 }
0x10b3   :  { %3089 = vmatprep.subr.bf16.mxu1 %v3614_v6 }
0x10b6   :  { %3090 = vmatpush3.bf16.msra.mxu1 %v3303_v43  ;;  %v2801_v43 = vld [vmem:[#allocation15 + $0x3] ss:$0 sm:$0xff] }
0x10b7   :  { %3091 = vmatprep.subr.bf16.mxu1 %v3614_v6 }
0x10ba   :  { %3092 = vmatpush3.bf16.msra.mxu1 %v3304_v62 }
0x10bb   :  { %3093 = vmatprep.subr.bf16.mxu1 %v3614_v6 }
0x10be   :  { %3094 = vmatpush3.bf16.msra.mxu1 %v3305_v63 }
0x1184   :  { %v2234_v21 = vpop.f32.mrb[52].mxu1 }
0x1185   :  { %v2235_v23 = vadd.f32 %v2773_v19, %v2234_v21  ;;  %v3077_v24 = vpop.f32.mrb[53].mxu1 }
0x1186   :  { %v2237_v26 = vpop.f32.mrb[54].mxu1 }
0x1187   :  { %v2238_v27 = vadd.f32 %v2773_v19, %v2237_v26  ;;  %v3078_v28 = vpop.f32.mrb[55].mxu1  ;;  %v2241_v25 = vadd.f32 %v2235_v23, %v4069_v41 }
0x1189   :  { %v2246_v22 = vsel %vm334_vm4, %v2241_v25, 0.0  ;;  %v2242_v30 = vadd.f32 %v2238_v27, %v4071_v42  ;;  %v3301_v42 = vld [vmem:[#allocation12 + $0x18] sm:$0xff]  }
0x118a   :  { %2247 = vadd.xlane.f32.xlu0 %v2246_v22  ;;  %3082 = vmatpush3.bf16.msra.mxu0 %v3301_v42 }
0x118b   :  { %v2249_v29 = vsel %vm334_vm4, %v2242_v30, 0.0 }
0x118c   :  { %2250 = vadd.xlane.f32.xlu1 %v2249_v29 }
0x1217   :  { %v2248_v20 = vpop.xlane.xlu0 %2247 }
0x1218   :  { %v2252_v31 = vmul.f32 0.03125, %v2248_v20 }
0x1219   :  { %v2251_v32 = vpop.xlane.xlu1 %2250 }
0x121a   :  { %v2254_v33 = vsub.f32 %v2241_v25, %v2252_v31  ;;  %v2253_v34 = vmul.f32 0.03125, %v2251_v32  ;;  %v3621_v32 = vmov 0.0|0.0  }
0x121b   :  { %3121 = vmatprep.subr.bf16.mxu0 %v3621_v32 }
0x121c   :  { %v2255_v35 = vsub.f32 %v2242_v30, %v2253_v34  ;;  %v2256_v36 = vmul.f32 %v2254_v33, %v2254_v33 }
0x121e   :  { %v2258_v37 = vsel %vm334_vm4, %v2256_v36, 0.0  ;;  %v2257_v38 = vmul.f32 %v2255_v35, %v2255_v35 }
0x121f   :  { %2259 = vadd.xlane.f32.xlu0 %v2258_v37 }
0x1220   :  { %v2261_v41 = vsel %vm334_vm4, %v2257_v38, 0.0 }
0x1223   :  { %2262 = vadd.xlane.f32.xlu0 %v2261_v41 }
0x12ac   :  { %v2260_v44 = vpop.xlane.xlu0 %2259 }
0x12ad   :  { %v2264_v45 = vmul.f32 0.03125, %v2260_v44  ;;  %v2490_v44 = vstv %s2489_s12 }
0x12ae   :  { %vm2491_vm12 = vcmp.eq.s32.totalorder %v3852_v9, %v2490_v44 }
0x12af   :  { %v2266_v46 = vadd.f32 1e-05, %v2264_v45  ;;  %v2496_v45 = vstv %s2495_s25 }
0x12b0   :  { %v2263_v47 = vpop.xlane.xlu0 %2262  ;;  %vm2497_vm13 = vcmp.eq.s32.totalorder %v3852_v9, %v2496_v45  ;;  %v2576_v9 = vld [vmem:[%s4290_s15 + $0x8] sm:$0xff] }
0x12b1   :  { %3378 = vrsqrt.f32 %v2266_v46  ;;  %v2265_v48 = vmul.f32 0.03125, %v2263_v47 }
0x12b3   :  { %v2267_v49 = vadd.f32 1e-05, %v2265_v48 }
0x12b5   :  { %3380 = vrsqrt.f32 %v2267_v49 }
0x12bb   :  { %v3379_v50 = vpop.eup %3378 }
0x12bc   :  { %v2270_v51 = vmul.f32 %v3379_v50, %v2254_v33 }
0x12be   :  { %v2276_v55 = vmul.f32 %v2779_v52, %v2270_v51 }
0x12bf   :  { %v3381_v54 = vpop.eup %3380 }
0x12c0   :  { %v2271_v56 = vmul.f32 %v3381_v54, %v2255_v35  ;;  %v2282_v59 = vadd.f32 %v2780_v57, %v2276_v55  ;;  %v2804_v54 = vsel %vm2497_vm13, 1.0, %v3614_v6  ;;  %v2575_v55 = vld [vmem:[%s4290_s15] sm:$0xff] }
0x12c2   :  { %v2277_v58 = vmul.f32 %v2779_v52, %v2271_v56  ;;  %v2802_v52 = vsel %vm2491_vm12, 1.0, %v3614_v6 }
0x12c4   :  { %v2283_v60 = vadd.f32 %v2780_v57, %v2277_v58  ;;  %v2501_v58 = vsel %vm2500_vm14, %v2802_v52, %v2804_v54 }
0x12c6   :  { %v2284_v61 = vpack.c.bf16 %v2283_v60, %v2282_v59 }
0x12c8   :  { %3084 = vmatmul.mubr.msk.bf16.vlgmr.msra.gmra.mrb[52].mxu0 %vm334_vm4, %v2284_v61  ;;  %v2578_v61 = vld [vmem:[%s4290_s15 + $0x18] sm:$0xff] }
0x12c9   :  { %3103 = vmatprep.mubr.msk.f32.mxu0 %vm3615_vm3, %v3614_v6 }
0x139b   :  { %v2347_v1 = vpop.f32.mrb[52].mxu0 }
0x139c   :  { %v2348_v2 = vadd.f32 %v2782_v0, %v2347_v1  ;;  %v3085_v3 = vpop.f32.mrb[53].mxu0  ;;  %v2806_v1 = vld [vmem:[#allocation17] ss:$0 sm:$0xff] }
0x139d   :  { %v2350_v4 = vpop.f32.mrb[54].mxu0 }
0x139e   :  { %v2351_v5 = vadd.f32 %v2782_v0, %v2350_v4  ;;  %v3086_v7 = vpop.f32.mrb[55].mxu0  ;;  %v2354_v8 = vmax.f32 %v2348_v2, 0.0 }
0x13a0   :  { %v2355_v10 = vmax.f32 %v2351_v5, 0.0 }
0x13a2   :  { %v2356_v11 = vpack.c.bf16 %v2355_v10, %v2354_v8 }
0x13a4   :  { %3096 = vmatmul.mubr.msk.bf16.vlgmr.msra.gmra.mrb[56].mxu1 %vm1308_vm11, %v2356_v11 }
0x1477   :  { %v2435_v13 = vpop.f32.mrb[56].mxu1 }
0x1478   :  { %v2436_v14 = vadd.f32 %v2794_v12, %v2435_v13  ;;  %v3097_v15 = vpop.f32.mrb[57].mxu1 }
0x1479   :  { %v2438_v16 = vpop.f32.mrb[58].mxu1 }
0x147a   :  { %v2439_v53 = vadd.f32 %v2794_v12, %v2438_v16  ;;  %v3098_v17 = vpop.f32.mrb[59].mxu1  ;;  %v2442_v18 = vadd.f32 %v2436_v14, %v2282_v59  ;;  %v3125_v59 = vpack.c.bf16 %v2576_v9, %v2575_v55 }
0x147c   :  { %v2447_v19 = vsel %vm334_vm4, %v2442_v18, 0.0  ;;  %v2443_v21 = vadd.f32 %v2439_v53, %v2283_v60  ;;  %v2577_v60 = vld [vmem:[%s4290_s15 + $0x10] sm:$0xff] }
0x147d   :  { %2448 = vadd.xlane.f32.xlu1 %v2447_v19  ;;  %v3128_v62 = vpack.c.bf16 %v2578_v61, %v2577_v60 }
0x147e   :  { %v2450_v23 = vsel %vm334_vm4, %v2443_v21, 0.0 }
0x147f   :  { %2451 = vadd.xlane.f32.xlu0 %v2450_v23 }
0x150a   :  { %v2449_v24 = vpop.xlane.xlu1 %2448 }
0x150b   :  { %v2453_v26 = vmul.f32 0.03125, %v2449_v24 }
0x150c   :  { %v2452_v27 = vpop.xlane.xlu0 %2451 }
0x150d   :  { %v2455_v28 = vsub.f32 %v2442_v18, %v2453_v26  ;;  %v2454_v25 = vmul.f32 0.03125, %v2452_v27 }
0x150f   :  { %v2456_v22 = vsub.f32 %v2443_v21, %v2454_v25  ;;  %v2457_v30 = vmul.f32 %v2455_v28, %v2455_v28 }
0x1511   :  { %v2459_v29 = vsel %vm334_vm4, %v2457_v30, 0.0  ;;  %v2458_v20 = vmul.f32 %v2456_v22, %v2456_v22 }
0x1512   :  { %2460 = vadd.xlane.f32.xlu1 %v2459_v29 }
0x1513   :  { %v2462_v31 = vsel %vm334_vm4, %v2458_v20, 0.0 }
0x1514   :  { %2463 = vadd.xlane.f32.xlu0 %v2462_v31 }
0x159f   :  { %v2461_v33 = vpop.xlane.xlu1 %2460 }
0x15a0   :  { %v2465_v34 = vmul.f32 0.03125, %v2461_v33 }
0x15a1   :  { %v2464_v35 = vpop.xlane.xlu0 %2463 }
0x15a2   :  { %v2467_v36 = vadd.f32 1e-05, %v2465_v34  ;;  %v2466_v37 = vmul.f32 0.03125, %v2464_v35 }
0x15a4   :  { %3382 = vrsqrt.f32 %v2467_v36  ;;  %v2468_v38 = vadd.f32 1e-05, %v2466_v37 }
0x15a6   :  { %3384 = vrsqrt.f32 %v2468_v38 }
0x15ae   :  { %v3383_v41 = vpop.eup %3382 }
0x15af   :  { %v2471_v42 = vmul.f32 %v3383_v41, %v2455_v28 }
0x15b0   :  { %v3385_v40 = vpop.eup %3384 }
0x15b1   :  { %v2472_v46 = vmul.f32 %v3385_v40, %v2456_v22  ;;  %v2477_v47 = vmul.f32 %v2800_v39, %v2471_v42 }
0x15b3   :  { %v2478_v48 = vmul.f32 %v2800_v39, %v2472_v46  ;;  %v2483_v49 = vadd.f32 %v2801_v43, %v2477_v47 }
0x15b5   :  { %v2484_v50 = vadd.f32 %v2801_v43, %v2478_v48  ;;  %v2485_v51 = vsel %vm334_vm4, %v2483_v49, 0.0 }
0x15b6   :  { %2487 = vst [vmem:[%s4292_s17] sm:$0xff] %v2485_v51 }
0x15b7   :  { %v2486_v56 = vsel %vm334_vm4, %v2484_v50, 0.0  ;;  %v3122_v57 = vpack.c.bf16 %v2484_v50, %v2483_v49 }
0x15b8   :  { %2488 = vst [vmem:[%s4292_s17 + $0x8] sm:$0xff] %v2486_v56  ;;  %s3622_s17 = smov [#allocation18]  }
0x15b9   :  { %3123 = vmatpush3.bf16.msra.mxu0 %v3122_v57  ;;  %s2668_s8 = sshll.u32 %s3622_s17, 4  ;;  %s2669_s8 = int_to_ptr.vmem [resolvable:$true] %s2668_s8 }
0x15ba   :  { %3124 = vmatprep.subr.bf16.mxu0 %v3621_v32  ;;  %s3560_s15 = scalar_lea.vmem %s2669_s8, 32  ;;  %p3565_p7 = scmp.lt.s32.totalorder %s2669_s8, %s2669_s8 }
0x15bb   :  { %p3561_p6 = scmp.ne.s32.totalorder %s2669_s8, %s3560_s15  ;;  %p3566_p8 = scmp.lt.s32.totalorder %s3560_s15, %s3560_s15 }
0x15bc   :  { %3104 = vmatmul.mubr.msk.f32.vlgmr.msra.gmra.mrb[2].mxu0 %vm194_vm0, %v2501_v58 }
0x15bd   :  { %3126 = vmatpush3.bf16.msra.mxu0 %v3125_v59  ;;  %3114 = vmatprep.mubr.msk.f32.mxu0 %vm3615_vm3, %v3614_v6  ;;  %p3567_p9 = por %p3566_p8, %p3565_p7 }
0x15be   :  { %3127 = vmatprep.subr.bf16.mxu0 %v3621_v32 }
0x15bf   :  { %p3568_p10 = pnand %p3567_p9, %p3561_p6 }
0x15c1   :  { %3129 = vmatpush3.bf16.msra.mxu0 %v3128_v62 }
0x168f   :  { %v2571_v63 = vpop.f32.mrb[2].mxu0 }
0x1690   :  { %v3105_v0 = vpop.f32.mrb[3].mxu0  ;;  %3115 = vmatmul.mubr.msk.f32.vlgmr.msra.gmra.mrb[56].mxu0 %vm334_vm4, %v2571_v63 }
0x1763   :  { %v2655_v2 = vpop.f32.mrb[56].mxu0 }
0x1764   :  { %v2656_v3 = vadd.f32 %v2806_v1, %v2655_v2  ;;  %v3116_v4 = vpop.f32.mrb[57].mxu0 }
0x1766   :  { %2659 = vst [vmem:[#allocation18] sm:$0x3] %v2656_v3 }
0x1767   :  { %3571 = shalt.err (!%p3568_p10)
}
0x1768   :  { %s4309_s16 = sld [smem:[#allocation29_spill]] }
0x176e   :  { %s3572_s28 = scalar_lea.hbm %s4309_s16, 32 }
0x176f   :  { %p3573_p11 = scmp.ne.s32.totalorder %s4309_s16, %s3572_s28  ;;  %p3576_p12 = scmp.lt.u32.totalorder %s3572_s28, %s4309_s16 }
0x1771   :  { %p3578_p13 = pnand %p3576_p12, %p3573_p11 }
0x1773   :  { %3581 = shalt.err (!%p3578_p13)
}
0x1774   :  { %2671 = dma.vmem_to_hbm [thread:$0]  %s2669_s8, 32, %s4309_s16, [#allocation4]  }
0x1775   :  { %3594 = dma.done.wait [#allocation4], 32  }
0x1776   :  { %3595 = vsyncadd [#allocation4], 4294967264 }
0x1777   :  { %2677 = vsyncpa [#allocation3], 1 }
0x1778   :  { %2678 = vsyncpa [#allocation10], 1 }
0x1779   :  { %2679 = vsyncpa [#allocation13], 1 }
0x177a   :  { %2680 = vsyncpa [#allocation16], 1 }
0x177b   :  { %2681 = vsyncpa [#allocation4], 1 }
0x177c   :  { %2682 = vsyncpa [#allocation5], 1 }
0x177d   :  { %2683 = vsyncpa [#allocation7], 1 }

</bundles_post_ra>
